<compile_context>
chip_gen: v5e
topology: v5e:2x2
jax: 0.10.0
libtpu: 0.0.40
codegen_flags: <defaults>
</compile_context>

<pallas_src>
import functools
import math

import jax
import jax.numpy as jnp
from jax.experimental import pallas as pl
from jax.experimental.pallas import tpu as pltpu


def pe_add_kernel(emb_ref, out_ref, *, d_model):
    ts, _, d = emb_ref.shape
    seq_off = pl.program_id(0) * ts

    # Positions / feature indices for this tile, shaped [ts, 1, d] so they
    # broadcast against the [ts, B, d] emb block along the batch (sublane) axis.
    pos = (jax.lax.broadcasted_iota(jnp.int32, (ts, 1, d), 0) + seq_off
           ).astype(jnp.float32)
    d_idx = jax.lax.broadcasted_iota(jnp.int32, (ts, 1, d), 2)
    parity = jnp.bitwise_and(d_idx, 1)                          # 0 -> sin, 1 -> cos

    # div_term[k] = exp(-(2k) * ln(10000) / d_model), with k = d // 2.
    k2 = (d_idx - parity).astype(jnp.float32)                   # 2 * (d // 2)
    inv_freq = jnp.exp(k2 * (-math.log(10000.0) / d_model))     # EUP
    angle = pos * inv_freq                                      # VPU
    pe = jnp.where(parity == 0, jnp.sin(angle), jnp.cos(angle))  # EUP + VPU select

    # TODO(synk): nn.Dropout(p=0.1) is treated as identity (eval mode);
    # training-mode dropout would need pltpu.prng_seed / pltpu.prng_random_bits.
    out_ref[...] = (emb_ref[...].astype(jnp.float32) + pe).astype(out_ref.dtype)


def positional_encoding(emb, step=None, *, seq_tile=None):
    """Pallas implementation of PositionalEncoding.forward (eval mode).

    `step` is accepted for signature parity with the PyTorch module; the
    reference forward ignores it.
    """
    del step
    S, B, D = emb.shape
    if D % 2 != 0:
        raise ValueError("ERROR!")
    if seq_tile is None:
        # VMEM bytes per sequence position per buffer (sublane axis pads to >=8,
        # lane axis to >=128).  ~2 MiB/buffer keeps (in + out) double buffers
        # far below the scoped-VMEM default on v5e/v6e/v7x.
        itemsize = jnp.dtype(emb.dtype).itemsize
        bytes_per_seq = max(B, 8) * max(D, 128) * itemsize
        seq_tile = max(1, min(S, (2 * 1024 * 1024) // bytes_per_seq))
    grid = (pl.cdiv(S, seq_tile),)
    kernel = functools.partial(pe_add_kernel, d_model=D)
    return pl.pallas_call(
        kernel,
        out_shape=jax.ShapeDtypeStruct((S, B, D), emb.dtype),
        grid=grid,
        in_specs=[pl.BlockSpec((seq_tile, B, D), lambda i: (i, 0, 0))],
        out_specs=pl.BlockSpec((seq_tile, B, D), lambda i: (i, 0, 0)),
        compiler_params=pltpu.CompilerParams(
            dimension_semantics=("parallel",)),
    )(emb)


if __name__ == "__main__":
    import numpy as np

    key = jax.random.PRNGKey(0)
    S, B, D = 16, 4, 128          # seq, batch, d_model (lane-dense D = 128)
    emb = jax.random.normal(key, (S, B, D), jnp.float32)

    out = positional_encoding(emb, seq_tile=8)   # grid=(2,) exercises pipelining
    jax.block_until_ready(out)

    # Pure-numpy reference mirroring the PyTorch buffer construction.
    position = np.arange(S, dtype=np.float32)[:, None]
    div_term = np.exp(np.arange(0, D, 2, dtype=np.float32)
                      * -(math.log(10000.0) / D))
    pe = np.zeros((S, D), dtype=np.float32)
    pe[:, 0::2] = np.sin(position * div_term)
    pe[:, 1::2] = np.cos(position * div_term)
    ref = np.asarray(emb) + pe[:, None, :]

    assert out.shape == (S, B, D)
    np.testing.assert_allclose(np.asarray(out), ref, rtol=1e-4, atol=1e-4)
    print("KERNEL_OK")
</pallas_src>

<mosaic_0001>
module attributes {stable_mosaic.version = 11 : i64} {
  func.func @pe_add_kernel(%arg0: i32, %arg1: memref<8x4x128xf32, #tpu.memory_space<vmem>>, %arg2: memref<8x4x128xf32, #tpu.memory_space<vmem>>) attributes {dimension_semantics = [#tpu.dimension_semantics<parallel>], iteration_bounds = array<i64: 2>, scalar_prefetch = 0 : i64, scratch_operands = 0 : i64, tpu.core_type = #tpu.core_type<tc>, window_params = [{transform_indices = @transform_0, window_bounds = array<i64: 8, 4, 128>}, {transform_indices = @transform_1, window_bounds = array<i64: 8, 4, 128>}]} {
    %c8_i32 = arith.constant 8 : i32
    %0 = arith.muli %arg0, %c8_i32 : i32
    %1 = tpu.iota {dimensions = array<i32: 0>} : vector<8x1x128xi32>
    %2 = vector.broadcast %0 : i32 to vector<8x1x128xi32>
    %3 = arith.addi %1, %2 : vector<8x1x128xi32>
    %4 = arith.sitofp %3 : vector<8x1x128xi32> to vector<8x1x128xf32>
    %5 = tpu.iota {dimensions = array<i32: 2>} : vector<8x1x128xi32>
    %c1_i32 = arith.constant 1 : i32
    %6 = vector.broadcast %c1_i32 : i32 to vector<8x1x128xi32>
    %7 = arith.andi %5, %6 : vector<8x1x128xi32>
    %8 = arith.subi %5, %7 : vector<8x1x128xi32>
    %9 = arith.sitofp %8 : vector<8x1x128xi32> to vector<8x1x128xf32>
    %cst = arith.constant -0.0719557852 : f32
    %10 = vector.broadcast %cst : f32 to vector<8x1x128xf32>
    %11 = arith.mulf %9, %10 : vector<8x1x128xf32>
    %12 = math.exp %11 : vector<8x1x128xf32>
    %13 = arith.mulf %4, %12 : vector<8x1x128xf32>
    %c0_i32 = arith.constant 0 : i32
    %14 = vector.broadcast %c0_i32 : i32 to vector<8x1x128xi32>
    %15 = arith.cmpi eq, %7, %14 : vector<8x1x128xi32>
    %16 = math.sin %13 : vector<8x1x128xf32>
    %17 = math.cos %13 : vector<8x1x128xf32>
    %18 = arith.select %15, %16, %17 : vector<8x1x128xi1>, vector<8x1x128xf32>
    %c0 = arith.constant 0 : index
    %c0_0 = arith.constant 0 : index
    %c0_1 = arith.constant 0 : index
    %19 = vector.load %arg1[%c0, %c0_0, %c0_1] : memref<8x4x128xf32, #tpu.memory_space<vmem>>, vector<8x4x128xf32>
    %20 = vector.broadcast %18 : vector<8x1x128xf32> to vector<8x4x128xf32>
    %21 = arith.addf %19, %20 : vector<8x4x128xf32>
    %c0_2 = arith.constant 0 : index
    %c0_3 = arith.constant 0 : index
    %c0_4 = arith.constant 0 : index
    %22 = vector.load %arg2[%c0_2, %c0_3, %c0_4] : memref<8x4x128xf32, #tpu.memory_space<vmem>>, vector<8x4x128xf32>
    tpu.vector_store %arg2[%c0_2, %c0_3, %c0_4], %21 {strides = array<i32>} : memref<8x4x128xf32, #tpu.memory_space<vmem>>, vector<8x4x128xf32>,
    return
  }
  func.func @transform_0(%arg0: i32) -> (i32, i32, i32) {
    %c0_i32 = arith.constant 0 : i32
    %c0_i32_0 = arith.constant 0 : i32
    %c0_i32_1 = arith.constant 0 : i32
    return %arg0, %c0_i32, %c0_i32_0 : i32, i32, i32
  }
  func.func @transform_1(%arg0: i32) -> (i32, i32, i32) {
    %c0_i32 = arith.constant 0 : i32
    %c0_i32_0 = arith.constant 0 : i32
    %c0_i32_1 = arith.constant 0 : i32
    return %arg0, %c0_i32, %c0_i32_0 : i32, i32, i32
  }
}

</mosaic_0001>

<bundles_post_ra>
// kernel: tpu_custom_call.1
= control target key start
LH: loop header
LB: loop body
LE: loop exit
PB: predicated region body
PF: predicated region fallthrough
CT: control target
= control target key end

     0   :  { %6 = vsyncpa [#allocation3], 0  ;;  %s4517_s0 = inlined_call_operand.hbm [shape: f32[16,4,128], index: 0, kind: input, shape index: {}]   ;;  %s4518_s1 = inlined_call_operand.hbm [shape: f32[16,4,128], index: 1, kind: output, shape index: {}]  }
   0x1   :  { %8 = vsyncpa [#allocation3 + $0x1], 0 }
   0x2   :  { %9 = vsyncpa [#allocation4], 0 }
   0x3   :  { %11 = vsyncpa [#allocation4 + $0x1], 0  ;;  %s3009_s6 = smov 0   ;;  %s3011_s7 = smov 0  }
   0x4   :  { %s3013_s8 = smov 0   ;;  %s3015_s9 = smov 0  }
   0x5 LB: > { %s3030_s10 = sadd.s32 4294967295, %s2986_s9   ;;  %s2766_s11 = sadd.s32 4294967294, %s2986_s9   ;;  %s2986_s9 = sphi %s3015_s9, %s4640_s9   ;;  %s2982_s8 = sphi %s3013_s8, %s4639_s8   ;;  %s2978_s7 = sphi %s3011_s7, %s4638_s7   ;;  %s2974_s6 = sphi %s3009_s6, %s4637_s6  }
   0x6   : > { %s3034_s12 = sadd.s32 1, %s2986_s9   ;;  %s24_s13 = sadd.s32 1, %s2982_s8 }
   0x7   : > { %s21_s14 = ssub.s32 %s2986_s9, %s3034_s12  ;;  %p31_p0 = scmp.ne.s32.totalorder %s2982_s8, %s2978_s7 }
   0x8   : > { %p22_p1 = scmp.eq.s32.totalorder %s21_s14, 0  ;;  %p32_p2 = scmp.eq.s32.totalorder %s2986_s9, 0 }
   0x9   : > { %p37_p3 = scmp.ne.s32.totalorder %s2978_s7, %s2974_s6  ;;  %p38_p4 = scmp.eq.s32.totalorder %s3030_s10, 0 }
   0xa   : > { %s3046_s15 = scalar_select %p22_p1, %s2982_s8, %s24_s13  }
   0xb   : > { %p3048_p5 = por %p32_p2, %p31_p0  ;;  %p3052_p6 = por %p38_p4, %p37_p3 }
   0xc   : > { %p61_p7 = scmp.eq.s32.totalorder %s3030_s10, 1  ;;  %p67_p8 = scmp.eq.s32.totalorder %s2766_s11, 1 }
   0xd   : > { %p2843_p10 = scmp.lt.s32.totalorder %s2986_s9, 2  ;;  %s87_s20 = sand.u32 1, %s2982_s8  }
   0xe   : > { %p3059_p11 = por %p61_p7, %p31_p0  ;;  %p3063_p12 = por %p67_p8, %p37_p3 }
   0xf   : > { %s2829_s21 = sshll.u32 %s2986_s9, 5  ;;  %s2769_s22 = sshll.u32 %s87_s20, 5 }
  0x10   : > { %s96_s25 = scalar_lea.hbm %s4517_s0, %s2829_s21  ;;  %s91_s27 = scalar_lea.vmem [#allocation2], %s2769_s22 }
  0x11   : > { %s97_s26 = sshll.u32 %s96_s25, 4  ;;  %s99_s28 = sshll.u32 %s91_s27, 4  ;;  %s98_s26 = int_to_ptr.hbm [resolvable:$true] %s97_s26  ;;  %s100_s28 = int_to_ptr.vmem [resolvable:$true] %s99_s28 }
  0x12   : > { %p3074_p13 = pnand %p2843_p10, %p3048_p5  ;;  %p2772_p0 = scmp.ge.s32.totalorder %s2986_s9, 1 }
  0x13   : > { %p107_p1 = scmp.lt.s32.totalorder %s2986_s9, 3  ;;  %s88_s30 = scalar_lea.sflag [#allocation3], %s87_s20 }
  0x14   : > { %s2890_s2 = sshra.s32 %s98_s26, 4  ;;  %p2894_p3 = pneg %p3074_p13  ;;  %s2891_s2 = int_to_ptr.hbm [resolvable:$true] %s2890_s2 }
  0x15   : > { %s2892_s3 = scalar_lea.hbm %s2891_s2, 32  ;;  %s2897_s11 = scalar_lea.hbm %s4517_s0, 64 }
  0x16   : > { %p2893_p2 = scmp.ne.s32.totalorder %s2891_s2, %s2892_s3  ;;  %p2898_p5 = scmp.lt.s32.totalorder %s2891_s2, %s4517_s0 }
  0x17   : > { %p2899_p8 = scmp.lt.s32.totalorder %s2897_s11, %s2892_s3 }
  0x18   : > { %p2895_p4 = pnand %p2894_p3, %p2893_p2 }
  0x19   : > { %p2900_p10 = por %p2899_p8, %p2898_p5 }
  0x1a   : > { %p2896_p7 = pneg %p2895_p4 }
  0x1c   : > { %p2901_p9 = pnand %p2900_p10, %p2896_p7 }
  0x1e   : > { %2904 = shalt.err (!%p2901_p9)
}
  0x1f   : > { %s2988_s16 = smov 64   ;;  %s2989_s20 = smov 4  }
  0x20   : > { %2838 = dma.hbm_to_vmem [thread:$0]  (!%p3074_p13), %s98_s26, 512, %s100_s28, %s88_s30, %s2988_s16, %s2988_s16, %s2989_s20  }
  0x21   : > { %p108_p2 = pnand %p2772_p0, %p107_p1 }
  0x23   : > { %111 = sbr.rel (%p108_p2) target bundleno = 410 (0x19a), region = 24 }
  0x28   : > { %s3095_s21 = sand.u32 1, %s2978_s7  }
  0x29   : > { %s2773_s22 = sshll.u32 %s3095_s21, 5  ;;  %s114_s23 = scalar_lea.sflag [#allocation3], %s3095_s21 }
  0x2a   : > { %s3101_s24 = scalar_lea.vmem [#allocation2], %s2773_s22 }
  0x2b   : > { %2965 = dma.done.wait (%p3052_p6), %s114_s23, 512  }
  0x2c   : > { %2967 = vsyncadd (%p3052_p6), %s114_s23, 4294966784  ;;  %v156_v0 = vlaneseq  ;;  %s2775_s25 = sshll.u32 %s3030_s10, 3  ;;  %v4544_v34 = vmov 683565275   ;;  %v4530_v36 = vmov 2475754826  }
  0x2d   : > { %v3114_v5 = vstv %s2775_s25  ;;  %v4526_v38 = vmov 2131351028   ;;  %v4528_v40 = vmov 2102212464   ;;  %v4524_v42 = vmov 920167782  }
  0x2e   : > { %v3107_v1 = vand.u32 127, %v156_v0  ;;  %v141_v8 = vadd.s32 1, %v3114_v5  ;;  %v148_v9 = vcvt.s32.f32 %v3114_v5  ;;  %v142_v15 = vadd.s32 2, %v3114_v5  ;;  %s4467_s17 = scalar_lea.vmem [#allocation5], %s2773_s22  ;;  %s2830_s26 = sshll.u32 %s3030_s10, 5 }
  0x2f   : > { %v4522_v51 = vmov 1326507024   ;;  %s2689_s29 = scalar_lea.hbm %s4518_s1, %s2830_s26  ;;  %s2690_s10 = sshll.u32 %s4467_s17, 4  ;;  %s2691_s10 = int_to_ptr.vmem [resolvable:$true] %s2690_s10 }
  0x30   : > { %4569 = vst [vmem:[#allocation8_spill] sm:$0xff] %v3107_v1  ;;  %v4519_v2 = vand.u32 1, %v3107_v1  ;;  %v149_v10 = vcvt.s32.f32 %v141_v8  ;;  %v150_v21 = vcvt.s32.f32 %v142_v15  ;;  %s2692_s30 = sshll.u32 %s2689_s29, 4  ;;  %s2678_s2 = scalar_lea.sflag [#allocation4], %s3095_s21  ;;  %s2693_s30 = int_to_ptr.hbm [resolvable:$true] %s2692_s30 }
  0x31   : > { %s2934_s3 = sshra.s32 %s2693_s30, 4  ;;  %s2940_s13 = scalar_lea.hbm %s4518_s1, 64  ;;  %s2935_s3 = int_to_ptr.hbm [resolvable:$true] %s2934_s3 }
  0x32   : > { %v159_v3 = vsub.s32 %v3107_v1, %v4519_v2  ;;  %s2936_s4 = scalar_lea.hbm %s2935_s3, 32  ;;  %p2941_p0 = scmp.lt.s32.totalorder %s2935_s3, %s4518_s1 }
  0x33   : > { %p2937_p6 = scmp.ne.s32.totalorder %s2935_s3, %s2936_s4  ;;  %p2942_p1 = scmp.lt.s32.totalorder %s2940_s13, %s2936_s4 }
  0x34   : > { %v160_v4 = vcvt.s32.f32 %v159_v3 }
  0x35   : > { %p2938_p9 = pnand %p2937_p6, %p3059_p11  ;;  %p2943_p3 = por %p2942_p1, %p2941_p0 }
  0x36   : > { %v161_v6 = vmul.f32 -0.071955785, %v160_v4 }
  0x37   : > { %p2939_p13 = pneg %p2938_p9 }
  0x38   : > { %v162_v7 = vmul.f32 1.442695, %v161_v6 }
  0x39   : > { %p2944_p4 = pnand %p2943_p3, %p2939_p13 }
  0x3a   : > { %2888 = vpow2.f32 %v162_v7 }
  0x40   : > { %v3118_v11 = vpop.eup %2888 }
  0x41   : > { %v3121_v12 = vmul.f32 %v3118_v11, %v148_v9  ;;  %v3124_v13 = vmul.f32 %v3118_v11, %v149_v10  ;;  %v3133_v26 = vmul.f32 %v3118_v11, %v150_v21 }
  0x43   : > { %v176_v14 = vand.u32 2139095040, %v3121_v12  ;;  %v331_v16 = vand.u32 2139095040, %v3124_v13  ;;  %v173_v17 = vand.u32 2147483647, %v3121_v12  ;;  %v328_v28 = vand.u32 2147483647, %v3124_v13 }
  0x44   : > { %v486_v45 = vand.u32 2139095040, %v3133_v26 }
  0x45   : > { %v177_v18 = vshrl.u32 %v176_v14, 23  ;;  %v332_v19 = vshrl.u32 %v331_v16, 23  ;;  %v180_v23 = vand.u32 8388607, %v173_v17  ;;  %v335_v44 = vand.u32 8388607, %v328_v28 }
  0x46   : > { %v487_v59 = vshrl.u32 %v486_v45, 23 }
  0x47   : > { %v2776_v20 = vadd.s32 4294967169, %v177_v18  ;;  %v2779_v22 = vadd.s32 4294967169, %v332_v19  ;;  %v181_v29 = vor.u32 8388608, %v180_v23  ;;  %v336_v3 = vor.u32 8388608, %v335_v44 }
  0x48   : > { %v2782_v14 = vadd.s32 4294967169, %v487_v59 }
  0x49   : > { %v183_v24 = vadd.s32 1, %v2776_v20  ;;  %v338_v25 = vadd.s32 1, %v2779_v22  ;;  %v3154_v49 = vshll.u32 %v181_v29, 8  ;;  %v3199_v23 = vshll.u32 %v336_v3, 8 }
  0x4b   : > { %vm184_vm0 = vcmp.gt.s32.totalorder %v183_v24, 0  ;;  %vm339_vm1 = vcmp.gt.s32.totalorder %v338_v25, 0  ;;  %v222_v0 = vand.u32 65535, %v3154_v49  ;;  %v223_v7 = vshrl.u32 %v3154_v49, 16 }
  0x4c   : > { %v185_v27 = vsel %vm184_vm0, %v183_v24, 0  ;;  %v340_v32 = vsel %vm339_vm1, %v338_v25, 0 }
  0x4d   : > { %v187_v30 = vand.u32 31, %v185_v27  ;;  %v3136_v31 = vshrl.u32 %v185_v27, 5  ;;  %v342_v53 = vand.u32 31, %v340_v32  ;;  %v3195_v20 = vshrl.u32 %v340_v32, 5 }
  0x4f   : > { %v3138_v33 = vsub.s32 32, %v187_v30  ;;  %v190_v35 = vshll.u32 %v4544_v34, %v187_v30  ;;  %v193_v37 = vshll.u32 %v4530_v36, %v187_v30  ;;  %v196_v39 = vshll.u32 %v4526_v38, %v187_v30 }
  0x50   : > { %v199_v41 = vshll.u32 %v4528_v40, %v187_v30  ;;  %v202_v43 = vshll.u32 %v4524_v42, %v187_v30  ;;  %vm205_vm2 = vcmp.lt.s32.totalorder %v3136_v31, 1  ;;  %vm208_vm3 = vcmp.lt.s32.totalorder %v3136_v31, 4 }
  0x51   : > { %v191_v46 = vshrl.u32 %v4530_v36, %v3138_v33  ;;  %v194_v47 = vshrl.u32 %v4526_v38, %v3138_v33  ;;  %v197_v48 = vshrl.u32 %v4528_v40, %v3138_v33  ;;  %v200_v50 = vshrl.u32 %v4524_v42, %v3138_v33 }
  0x52   : > { %v203_v52 = vshrl.u32 %v4522_v51, %v3138_v33  ;;  %vm207_vm4 = vcmp.lt.s32.totalorder %v3136_v31, 3  ;;  %vm206_vm5 = vcmp.lt.s32.totalorder %v3136_v31, 2  ;;  %v3189_v8 = vsub.s32 32, %v342_v53 }
  0x53   : > { %v3161_v54 = vor.u32 %v191_v46, %v190_v35  ;;  %v3163_v55 = vor.u32 %v194_v47, %v193_v37  ;;  %v3165_v56 = vor.u32 %v197_v48, %v196_v39  ;;  %v201_v57 = vor.u32 %v200_v50, %v199_v41 }
  0x54   : > { %v204_v58 = vor.u32 %v203_v52, %v202_v43  ;;  %v345_v21 = vshll.u32 %v4544_v34, %v342_v53  ;;  %v348_v22 = vshll.u32 %v4530_v36, %v342_v53  ;;  %v346_v29 = vshrl.u32 %v4530_v36, %v3189_v8 }
  0x55   : > { %v213_v60 = vsel %vm205_vm2, %v3161_v54, %v3163_v55  ;;  %v217_v61 = vsel %vm205_vm2, %v3163_v55, %v3165_v56  ;;  %v214_v62 = vsel %vm208_vm3, %v201_v57, 920167782  ;;  %v349_v32 = vshrl.u32 %v4526_v38, %v3189_v8 }
  0x56   : > { %v218_v63 = vsel %vm208_vm3, %v204_v58, 1326507024  ;;  %v215_v4 = vsel %vm207_vm4, %v3165_v56, %v214_v62  ;;  %v351_v43 = vshll.u32 %v4526_v38, %v342_v53  ;;  %v352_v44 = vshrl.u32 %v4528_v40, %v3189_v8 }
  0x57   : > { %v219_v6 = vsel %vm207_vm4, %v201_v57, %v218_v63  ;;  %v216_v9 = vsel %vm206_vm5, %v213_v60, %v215_v4  ;;  %v3214_v52 = vor.u32 %v346_v29, %v345_v21  ;;  %v354_v57 = vshll.u32 %v4528_v40, %v342_v53 }
  0x58   : > { %v220_v10 = vsel %vm206_vm5, %v217_v61, %v219_v6  ;;  %v246_v18 = vand.u32 65535, %v216_v9  ;;  %v247_v19 = vshrl.u32 %v216_v9, 16  ;;  %v4533_v58 = vmov 0  }
  0x59   : > { %v224_v15 = vand.u32 65535, %v220_v10  ;;  %v225_v16 = vshrl.u32 %v220_v10, 16  ;;  %v355_v61 = vshrl.u32 %v4524_v42, %v3189_v8  ;;  %v3221_v63 = vor.u32 %v349_v32, %v348_v22 }
  0x5a   : > { %v248_v30 = vmul.u32 %v246_v18, %v222_v0  ;;  %v249_v35 = vmul.u32 %v247_v19, %v222_v0  ;;  %v3205_v37 = vmul.u32 %v246_v18, %v223_v7  ;;  %v251_v46 = vmul.u32 %v247_v19, %v223_v7 }
  0x5b   : > { %v226_v24 = vmul.u32 %v224_v15, %v222_v0  ;;  %v227_v25 = vmul.u32 %v225_v16, %v222_v0  ;;  %v3201_v27 = vmul.u32 %v224_v15, %v223_v7  ;;  %v229_v45 = vmul.u32 %v225_v16, %v223_v7 }
  0x5c   : > { %v252_v47 = vshll.u32 %v249_v35, 16  ;;  %v254_v48 = vshll.u32 %v3205_v37, 16  ;;  %v357_v0 = vshll.u32 %v4524_v42, %v342_v53  ;;  %v3224_v6 = vor.u32 %v352_v44, %v351_v43 }
  0x5d   : > { %v230_v39 = vshll.u32 %v227_v25, 16  ;;  %v232_v41 = vshll.u32 %v3201_v27, 16  ;;  %v356_v10 = vor.u32 %v355_v61, %v354_v57  ;;  %v358_v15 = vshrl.u32 %v4522_v51, %v3189_v8 }
  0x5e   : > { %vm256_vm7 = vc.u32 %v248_v30, %v252_v47  ;;  %v258_v60 = vadd.s32 %v252_v47, %v248_v30  ;;  %v253_v16 = vshrl.u32 %v249_v35, 16  ;;  %vm360_vm10 = vcmp.lt.s32.totalorder %v3195_v20, 1 }
  0x5f   : > { %vm234_vm6 = vc.u32 %v226_v24, %v230_v39  ;;  %v236_v50 = vadd.s32 %v230_v39, %v226_v24  ;;  %v257_v62 = vsel %vm256_vm7, 1, %v4533_v58  ;;  %vm362_vm11 = vcmp.lt.s32.totalorder %v3195_v20, 3 }
  0x60   : > { %v235_v59 = vsel %vm234_vm6, 1, %v4533_v58  ;;  %v259_v4 = vadd.s32 %v257_v62, %v251_v46  ;;  %vm260_vm9 = vc.u32 %v258_v60, %v254_v48  ;;  %v493_v18 = vadd.s32 1, %v2782_v14 }
  0x61   : > { %vm238_vm8 = vc.u32 %v236_v50, %v232_v41  ;;  %v237_v3 = vadd.s32 %v235_v59, %v229_v45  ;;  %v261_v9 = vsel %vm260_vm9, 1, %v4533_v58  ;;  %v359_v19 = vor.u32 %v358_v15, %v357_v0 }
  0x62   : > { %v239_v7 = vsel %vm238_vm8, 1, %v4533_v58  ;;  %v263_v53 = vadd.s32 %v261_v9, %v259_v4  ;;  %vm361_vm12 = vcmp.lt.s32.totalorder %v3195_v20, 2  ;;  %vm363_vm13 = vcmp.lt.s32.totalorder %v3195_v20, 4 }
  0x63   : > { %v231_v21 = vshrl.u32 %v227_v25, 16  ;;  %v241_v22 = vadd.s32 %v239_v7, %v237_v3  ;;  %v368_v24 = vsel %vm360_vm10, %v3214_v52, %v3221_v63  ;;  %v369_v29 = vsel %vm363_vm13, %v356_v10, 920167782 }
  0x64   : > { %v370_v14 = vsel %vm362_vm11, %v3224_v6, %v369_v29  ;;  %v372_v30 = vsel %vm360_vm10, %v3221_v63, %v3224_v6  ;;  %v377_v25 = vand.u32 65535, %v3199_v23  ;;  %v378_v35 = vshrl.u32 %v3199_v23, 16 }
  0x65   : > { %v189_v32 = vshrl.u32 %v4544_v34, %v3138_v33  ;;  %v210_v39 = vsel %vm208_vm3, %v3165_v56, 2102212464  ;;  %v371_v41 = vsel %vm361_vm12, %v368_v24, %v370_v14  ;;  %v373_v43 = vsel %vm363_vm13, %v359_v19, 1326507024 }
  0x66   : > { %v255_v44 = vshrl.u32 %v3205_v37, 16  ;;  %v264_v45 = vadd.s32 %v263_v53, %v253_v16  ;;  %v374_v46 = vsel %vm362_vm11, %v356_v10, %v373_v43  ;;  %v401_v47 = vand.u32 65535, %v371_v41 }
  0x67   : > { %v233_v50 = vshrl.u32 %v3201_v27, 16  ;;  %v242_v33 = vadd.s32 %v241_v22, %v231_v21  ;;  %v375_v57 = vsel %vm361_vm12, %v372_v30, %v374_v46  ;;  %v402_v56 = vshrl.u32 %v371_v41, 16 }
  0x68   : > { %v379_v59 = vand.u32 65535, %v375_v57  ;;  %v380_v61 = vshrl.u32 %v375_v57, 16  ;;  %vm494_vm14 = vcmp.gt.s32.totalorder %v493_v18, 0  ;;  %v209_v62 = vsel %vm205_vm2, %v189_v32, %v3161_v54 }
  0x69   : > { %v211_v37 = vsel %vm207_vm4, %v3163_v55, %v210_v39  ;;  %v404_v0 = vmul.u32 %v402_v56, %v377_v25  ;;  %v405_v3 = vmul.u32 %v401_v47, %v378_v35  ;;  %v265_v4 = vadd.s32 %v264_v45, %v255_v44 }
  0x6a   : > { %v381_v27 = vmul.u32 %v379_v59, %v377_v25  ;;  %v382_v7 = vmul.u32 %v380_v61, %v377_v25  ;;  %v403_v9 = vmul.u32 %v401_v47, %v377_v25  ;;  %v3270_v10 = vadd.s32 %v242_v33, %v233_v50 }
  0x6b   : > { %v3272_v15 = vadd.s32 %v258_v60, %v254_v48  ;;  %v383_v16 = vmul.u32 %v379_v59, %v378_v35  ;;  %v407_v53 = vshll.u32 %v404_v0, 16  ;;  %v384_v19 = vmul.u32 %v380_v61, %v378_v35 }
  0x6c   : > { %v385_v21 = vshll.u32 %v382_v7, 16  ;;  %v495_v22 = vsel %vm494_vm14, %v493_v18, 0  ;;  %v212_v54 = vsel %vm206_vm5, %v209_v62, %v211_v37  ;;  %v406_v55 = vmul.u32 %v402_v56, %v378_v35 }
  0x6d   : > { %v387_v24 = vshll.u32 %v383_v16, 16  ;;  %v409_v29 = vshll.u32 %v405_v3, 16  ;;  %v269_v14 = vadd.s32 1, %v265_v4  ;;  %vm411_vm0 = vc.u32 %v403_v9, %v407_v53 }
  0x6e   : > { %vm389_vm15 = vc.u32 %v381_v27, %v385_v21  ;;  %v391_v30 = vadd.s32 %v385_v21, %v381_v27  ;;  %vm268_vm1 = vc.u32 %v3270_v10, %v3272_v15  ;;  %v412_v60 = vsel %vm411_vm0, 1, %v4533_v58 }
  0x6f   : > { %v390_v48 = vsel %vm389_vm15, 1, %v4533_v58  ;;  %v413_v25 = vadd.s32 %v407_v53, %v403_v9  ;;  %v266_v18 = vmul.u32 %v3154_v49, %v212_v54  ;;  %v386_v32 = vshrl.u32 %v382_v7, 16 }
  0x70   : > { %v392_v31 = vadd.s32 %v390_v48, %v384_v19  ;;  %vm393_vm2 = vc.u32 %v391_v30, %v387_v24  ;;  %v408_v39 = vshrl.u32 %v404_v0, 16  ;;  %v414_v41 = vadd.s32 %v412_v60, %v406_v55 }
  0x71   : > { %v394_v35 = vsel %vm393_vm2, 1, %v4533_v58  ;;  %vm415_vm3 = vc.u32 %v413_v25, %v409_v29  ;;  %v270_v43 = vsel %vm268_vm1, %v269_v14, %v265_v4  ;;  %v497_v46 = vand.u32 31, %v495_v22 }
  0x72   : > { %v396_v44 = vadd.s32 %v394_v35, %v392_v31  ;;  %v416_v45 = vsel %vm415_vm3, 1, %v4533_v58  ;;  %v344_v47 = vshrl.u32 %v4544_v34, %v3189_v8  ;;  %v410_v50 = vshrl.u32 %v405_v3, 16 }
  0x73   : > { %v418_v33 = vadd.s32 %v416_v45, %v414_v41  ;;  %v365_v49 = vsel %vm363_vm13, %v3224_v6, 2102212464  ;;  %v388_v57 = vshrl.u32 %v383_v16, 16  ;;  %v271_v59 = vadd.s32 %v270_v43, %v266_v18 }
  0x74   : > { %v397_v56 = vadd.s32 %v396_v44, %v386_v32  ;;  %v3288_v62 = vsub.s32 32, %v497_v46  ;;  %v364_v37 = vsel %vm360_vm10, %v344_v47, %v3214_v52  ;;  %v366_v8 = vsel %vm362_vm11, %v3221_v63, %v365_v49 }
  0x75   : > { %v419_v61 = vadd.s32 %v418_v33, %v408_v39  ;;  %v3298_v4 = vadd.s32 %v413_v25, %v409_v29  ;;  %v272_v6 = vadd.s32 536870912, %v271_v59  ;;  %v483_v27 = vand.u32 2147483647, %v3133_v26 }
  0x76   : > { %v3296_v3 = vadd.s32 %v397_v56, %v388_v57  ;;  %v367_v7 = vsel %vm361_vm12, %v364_v37, %v366_v8  ;;  %v3303_v9 = vshrl.u32 %v495_v22, 5  ;;  %v503_v16 = vshll.u32 %v4530_v36, %v497_v46 }
  0x77   : > { %v420_v0 = vadd.s32 %v419_v61, %v410_v50  ;;  %v504_v52 = vshrl.u32 %v4526_v38, %v3288_v62  ;;  %v506_v63 = vshll.u32 %v4526_v38, %v497_v46  ;;  %v509_v19 = vshll.u32 %v4528_v40, %v497_v46 }
  0x78   : > { %v510_v21 = vshrl.u32 %v4524_v42, %v3288_v62  ;;  %vm423_vm4 = vc.u32 %v3296_v3, %v3298_v4  ;;  %v507_v20 = vshrl.u32 %v4528_v40, %v3288_v62  ;;  %v512_v22 = vshll.u32 %v4524_v42, %v497_v46 }
  0x79   : > { %v424_v53 = vadd.s32 1, %v420_v0  ;;  %v513_v54 = vshrl.u32 %v4522_v51, %v3288_v62  ;;  %v3319_v24 = vshrl.u32 %v272_v6, 30  ;;  %v490_v55 = vand.u32 8388607, %v483_v27 }
  0x7a   : > { %v421_v29 = vmul.u32 %v3199_v23, %v367_v7  ;;  %v500_v14 = vshll.u32 %v4544_v34, %v497_v46  ;;  %v501_v30 = vshrl.u32 %v4530_v36, %v3288_v62  ;;  %v511_v60 = vor.u32 %v510_v21, %v509_v19 }
  0x7b   : > { %v425_v48 = vsel %vm423_vm4, %v424_v53, %v420_v0  ;;  %v3327_v25 = vor.u32 %v504_v52, %v503_v16  ;;  %v508_v18 = vor.u32 %v507_v20, %v506_v63  ;;  %v514_v32 = vor.u32 %v513_v54, %v512_v22 }
  0x7c   : > { %vm518_vm5 = vcmp.lt.s32.totalorder %v3303_v9, 4  ;;  %v274_v31 = vshll.u32 %v3319_v24, 30  ;;  %v491_v35 = vor.u32 8388608, %v490_v55  ;;  %vm515_vm6 = vcmp.lt.s32.totalorder %v3303_v9, 1 }
  0x7d   : > { %v426_v39 = vadd.s32 %v425_v48, %v421_v29  ;;  %v3332_v23 = vor.u32 %v501_v30, %v500_v14  ;;  %vm517_vm7 = vcmp.lt.s32.totalorder %v3303_v9, 3  ;;  %vm516_vm8 = vcmp.lt.s32.totalorder %v3303_v9, 2 }
  0x7e   : > { %v524_v41 = vsel %vm518_vm5, %v511_v60, 920167782  ;;  %v527_v43 = vsel %vm515_vm6, %v3327_v25, %v508_v18  ;;  %v528_v44 = vsel %vm518_vm5, %v514_v32, 1326507024  ;;  %v3343_v45 = vsub.s32 %v271_v59, %v274_v31 }
  0x7f   : > { %v529_v46 = vsel %vm517_vm7, %v511_v60, %v528_v44  ;;  %v3347_v47 = vshll.u32 %v491_v35, 8  ;;  %v427_v50 = vadd.s32 536870912, %v426_v39  ;;  %v523_v33 = vsel %vm515_vm6, %v3332_v23, %v3327_v25 }
  0x80   : > { %v525_v49 = vsel %vm517_vm7, %v508_v18, %v524_v41  ;;  %v530_v57 = vsel %vm516_vm8, %v527_v43, %v529_v46  ;;  %v277_v6 = vsub.s32 0, %v3343_v45  ;;  %vm276_vm9 = vcmp.lt.s32.totalorder %v3343_v45, 0 }
  0x81   : > { %v532_v56 = vand.u32 65535, %v3347_v47  ;;  %v533_v59 = vshrl.u32 %v3347_v47, 16  ;;  %v534_v61 = vand.u32 65535, %v530_v57  ;;  %v535_v37 = vshrl.u32 %v530_v57, 16 }
  0x82   : > { %v526_v8 = vsel %vm516_vm8, %v523_v33, %v525_v49  ;;  %v3362_v7 = vshrl.u32 %v427_v50, 30  ;;  %v143_v21 = vadd.s32 3, %v3114_v5  ;;  %v278_v54 = vsel %vm276_vm9, %v277_v6, %v3343_v45 }
  0x83   : > { %v538_v0 = vmul.u32 %v534_v61, %v533_v59  ;;  %v536_v16 = vmul.u32 %v534_v61, %v532_v56  ;;  %v537_v52 = vmul.u32 %v535_v37, %v532_v56  ;;  %v557_v19 = vshrl.u32 %v526_v8, 16 }
  0x84   : > { %v539_v20 = vmul.u32 %v535_v37, %v533_v59  ;;  %v556_v22 = vand.u32 65535, %v526_v8  ;;  %v429_v55 = vshll.u32 %v3362_v7, 30  ;;  %v279_v48 = vclz %v278_v54 }
  0x85   : > { %v540_v53 = vshll.u32 %v537_v52, 16  ;;  %v542_v63 = vshll.u32 %v538_v0, 16  ;;  %v559_v30 = vmul.u32 %v557_v19, %v532_v56  ;;  %v151_v31 = vcvt.s32.f32 %v143_v21 }
  0x86   : > { %v560_v32 = vmul.u32 %v556_v22, %v533_v59  ;;  %v3369_v35 = vsub.s32 %v426_v39, %v429_v55  ;;  %v558_v41 = vmul.u32 %v556_v22, %v532_v56  ;;  %v541_v44 = vshrl.u32 %v537_v52, 16 }
  0x87   : > { %vm544_vm10 = vc.u32 %v536_v16, %v540_v53  ;;  %v546_v29 = vadd.s32 %v540_v53, %v536_v16  ;;  %v561_v50 = vmul.u32 %v557_v19, %v533_v59  ;;  %v562_v33 = vshll.u32 %v559_v30, 16 }
  0x88   : > { %v545_v14 = vsel %vm544_vm10, 1, %v4533_v58  ;;  %v2777_v49 = vadd.s32 4294967294, %v279_v48  ;;  %v499_v57 = vshrl.u32 %v4544_v34, %v3288_v62  ;;  %v564_v61 = vshll.u32 %v560_v32, 16 }
  0x89   : > { %vm548_vm11 = vc.u32 %v546_v29, %v542_v63  ;;  %v547_v60 = vadd.s32 %v545_v14, %v539_v20  ;;  %v3375_v37 = vmul.f32 %v3118_v11, %v151_v31  ;;  %v432_v8 = vsub.s32 0, %v3369_v35 }
  0x8a   : > { %v549_v43 = vsel %vm548_vm11, 1, %v4533_v58  ;;  %vm566_vm12 = vc.u32 %v558_v41, %v562_v33  ;;  %vm431_vm13 = vcmp.lt.s32.totalorder %v3369_v35, 0  ;;  %v520_v39 = vsel %vm518_vm5, %v508_v18, 2102212464 }
  0x8b   : > { %v551_v46 = vadd.s32 %v549_v43, %v547_v60  ;;  %v567_v56 = vsel %vm566_vm12, 1, %v4533_v58  ;;  %v568_v59 = vadd.s32 %v562_v33, %v558_v41  ;;  %v543_v6 = vshrl.u32 %v538_v0, 16 }
  0x8c   : > { %v569_v52 = vadd.s32 %v567_v56, %v561_v50  ;;  %vm2778_vm14 = vcmp.lt.s32.totalorder %v2777_v49, 0  ;;  %v519_v62 = vsel %vm515_vm6, %v499_v57, %v3332_v23  ;;  %v563_v53 = vshrl.u32 %v559_v30, 16 }
  0x8d   : > { %v552_v16 = vadd.s32 %v551_v46, %v541_v44  ;;  %vm570_vm15 = vc.u32 %v568_v59, %v564_v61  ;;  %v433_v63 = vsel %vm431_vm13, %v432_v8, %v3369_v35  ;;  %v521_v19 = vsel %vm517_vm7, %v3327_v25, %v520_v39 }
  0x8e   : > { %v571_v18 = vsel %vm570_vm15, 1, %v4533_v58  ;;  %v641_v21 = vand.u32 2139095040, %v3375_v37  ;;  %v565_v0 = vshrl.u32 %v560_v32, 16  ;;  %v282_v22 = vsel %vm2778_vm14, 0, %v2777_v49 }
  0x8f   : > { %v573_v20 = vadd.s32 %v571_v18, %v569_v52  ;;  %v3391_v54 = vadd.s32 %v552_v16, %v543_v6  ;;  %v3393_v55 = vadd.s32 %v568_v59, %v564_v61  ;;  %v434_v29 = vclz %v433_v63 }
  0x90   : > { %v642_v23 = vshrl.u32 %v641_v21, 23  ;;  %v522_v14 = vsel %vm516_vm8, %v519_v62, %v521_v19  ;;  %v287_v60 = vsub.s32 4294967266, %v282_v22  ;;  %v267_v44 = vadd.s32 %v3272_v15, %v3270_v10 }
  0x91   : > { %v574_v30 = vadd.s32 %v573_v20, %v563_v53  ;;  %v576_v31 = vmul.u32 %v3347_v47, %v522_v14  ;;  %vm578_vm0 = vc.u32 %v3391_v54, %v3393_v55  ;;  %v2780_v41 = vadd.s32 4294967294, %v434_v29 }
  0x92   : > { %v2785_v48 = vadd.s32 4294967169, %v642_v23  ;;  %v283_v46 = vsub.s32 32, %v282_v22  ;;  %v144_v9 = vadd.s32 4, %v3114_v5  ;;  %v288_v50 = vadd.s32 127, %v287_v60 }
  0x93   : > { %v575_v25 = vadd.s32 %v574_v30, %v565_v0  ;;  %v4521_v61 = vand.u32 2147483647, %v3375_v37  ;;  %vm2781_vm2 = vcmp.lt.s32.totalorder %v2780_v41, 0  ;;  %v284_v8 = vshll.u32 %v3343_v45, %v282_v22 }
  0x94   : > { %v648_v32 = vadd.s32 1, %v2785_v48  ;;  %v285_v39 = vshrl.u32 %v267_v44, %v283_v46  ;;  %v152_v56 = vcvt.s32.f32 %v144_v9  ;;  %v289_v59 = vshll.u32 %v288_v50, 23 }
  0x95   : > { %v579_v43 = vadd.s32 1, %v575_v25  ;;  %v437_v10 = vsel %vm2781_vm2, 0, %v2780_v41  ;;  %v645_v16 = vand.u32 8388607, %v4521_v61  ;;  %vm175_vm7 = vcmp.lt.s32.totalorder %v3121_v12, 0 }
  0x96   : > { %vm649_vm1 = vcmp.gt.s32.totalorder %v648_v32, 0  ;;  %v286_v19 = vor.u32 %v285_v39, %v284_v8  ;;  %v3422_v20 = vmul.f32 %v3118_v11, %v152_v56  ;;  %v290_v22 = vor.u32 4788187, %v289_v59 }
  0x97   : > { %v580_v33 = vsel %vm578_vm0, %v579_v43, %v575_v25  ;;  %v650_v49 = vsel %vm649_vm1, %v648_v32, 0  ;;  %v442_v29 = vsub.s32 4294967266, %v437_v10  ;;  %v646_v30 = vor.u32 8388608, %v645_v16 }
  0x98   : > { %v581_v57 = vadd.s32 %v580_v33, %v576_v31  ;;  %v652_v47 = vand.u32 31, %v650_v49  ;;  %v3416_v18 = vshrl.u32 %v650_v49, 5  ;;  %v293_v41 = vcvt.s32.f32 %v286_v19 }
  0x99   : > { %v422_v43 = vadd.s32 %v3298_v4, %v3296_v3  ;;  %v291_v46 = vand.u32 2147483647, %v290_v22  ;;  %v438_v9 = vsub.s32 32, %v437_v10  ;;  %v443_v50 = vadd.s32 127, %v442_v29 }
  0x9a   : > { %v3405_v6 = vsub.s32 32, %v652_v47  ;;  %v582_v15 = vadd.s32 536870912, %v581_v57  ;;  %v655_v52 = vshll.u32 %v4544_v34, %v652_v47  ;;  %v658_v53 = vshll.u32 %v4530_v36, %v652_v47 }
  0x9b   : > { %v664_v63 = vshll.u32 %v4528_v40, %v652_v47  ;;  %v661_v21 = vshll.u32 %v4526_v38, %v652_v47  ;;  %v667_v31 = vshll.u32 %v4524_v42, %v652_v47  ;;  %vm670_vm3 = vcmp.lt.s32.totalorder %v3416_v18, 1 }
  0x9c   : > { %v656_v62 = vshrl.u32 %v4530_v36, %v3405_v6  ;;  %v659_v45 = vshrl.u32 %v4526_v38, %v3405_v6  ;;  %v662_v0 = vshrl.u32 %v4528_v40, %v3405_v6  ;;  %v665_v23 = vshrl.u32 %v4524_v42, %v3405_v6 }
  0x9d   : > { %v3426_v14 = vshrl.u32 %v582_v15, 30  ;;  %v668_v32 = vshrl.u32 %v4522_v51, %v3405_v6  ;;  %vm672_vm4 = vcmp.lt.s32.totalorder %v3416_v18, 3  ;;  %vm673_vm5 = vcmp.lt.s32.totalorder %v3416_v18, 4 }
  0x9e   : > { %v3428_v48 = vor.u32 %v656_v62, %v655_v52  ;;  %v3430_v60 = vor.u32 %v659_v45, %v658_v53  ;;  %v666_v25 = vor.u32 %v665_v23, %v664_v63  ;;  %v663_v44 = vor.u32 %v662_v0, %v661_v21 }
  0x9f   : > { %v584_v33 = vshll.u32 %v3426_v14, 30  ;;  %v3441_v49 = vshll.u32 %v646_v30, 8  ;;  %v796_v47 = vand.u32 2139095040, %v3422_v20  ;;  %v669_v8 = vor.u32 %v668_v32, %v667_v31 }
  0xa0   : > { %vm671_vm6 = vcmp.lt.s32.totalorder %v3416_v18, 2  ;;  %v678_v3 = vsel %vm670_vm3, %v3428_v48, %v3430_v60  ;;  %v679_v4 = vsel %vm673_vm5, %v666_v25, 920167782  ;;  %v3452_v39 = vadd.s32 5, %v3114_v5 }
  0xa1   : > { %v680_v56 = vsel %vm672_vm4, %v663_v44, %v679_v4  ;;  %v3457_v59 = vadd.s32 6, %v3114_v5  ;;  %v294_v15 = vmul.f32 %v293_v41, %v291_v46  ;;  %v439_v16 = vshll.u32 %v3369_v35, %v437_v10 }
  0xa2   : > { %v440_v52 = vshrl.u32 %v422_v43, %v438_v9  ;;  %v3460_v62 = vsub.s32 %v581_v57, %v584_v33  ;;  %v681_v53 = vsel %vm671_vm6, %v678_v3, %v680_v56  ;;  %v682_v45 = vsel %vm670_vm3, %v3430_v60, %v663_v44 }
  0xa3   : > { %v797_v63 = vshrl.u32 %v796_v47, 23  ;;  %v3468_v19 = vadd.s32 7, %v3114_v5  ;;  %v444_v21 = vshll.u32 %v443_v50, 23  ;;  %v683_v0 = vsel %vm673_vm5, %v669_v8, 1326507024 }
  0xa4   : > { %v687_v35 = vand.u32 65535, %v3441_v49  ;;  %v684_v57 = vsel %vm672_vm4, %v666_v25, %v683_v0  ;;  %v688_v10 = vshrl.u32 %v3441_v49, 16  ;;  %v711_v22 = vand.u32 65535, %v681_v53 }
  0xa5   : > { %v712_v23 = vshrl.u32 %v681_v53, 16  ;;  %v153_v29 = vcvt.s32.f32 %v3452_v39  ;;  %v295_v30 = vxor.u32 2147483648, %v294_v15  ;;  %v3477_v31 = vor.u32 %v440_v52, %v439_v16 }
  0xa6   : > { %v685_v5 = vsel %vm671_vm6, %v682_v45, %v684_v57  ;;  %v587_v32 = vsub.s32 0, %v3460_v62  ;;  %v2788_v43 = vadd.s32 4294967169, %v797_v63  ;;  %v445_v46 = vor.u32 4788187, %v444_v21 }
  0xa7   : > { %v689_v41 = vand.u32 65535, %v685_v5  ;;  %vm586_vm8 = vcmp.lt.s32.totalorder %v3460_v62, 0  ;;  %v654_v25 = vshrl.u32 %v4544_v34, %v3405_v6  ;;  %v690_v9 = vshrl.u32 %v685_v5, 16 }
  0xa8   : > { %v713_v33 = vmul.u32 %v711_v22, %v687_v35  ;;  %v714_v47 = vmul.u32 %v712_v23, %v687_v35  ;;  %v715_v8 = vmul.u32 %v711_v22, %v688_v10  ;;  %v296_v3 = vsel %vm175_vm7, %v295_v30, %v294_v15 }
  0xa9   : > { %v693_v50 = vmul.u32 %v689_v41, %v688_v10  ;;  %v448_v4 = vcvt.s32.f32 %v3477_v31  ;;  %v691_v56 = vmul.u32 %v689_v41, %v687_v35  ;;  %v692_v16 = vmul.u32 %v690_v9, %v687_v35 }
  0xaa   : > { %vm3491_vm9 = vcmp.le.f32.partialorder %v173_v17, 0.7853982  ;;  %v588_v6 = vsel %vm586_vm8, %v587_v32, %v3460_v62  ;;  %v716_v53 = vmul.u32 %v712_v23, %v688_v10  ;;  %v717_v45 = vshll.u32 %v714_v47, 16 }
  0xab   : > { %v803_v63 = vadd.s32 1, %v2788_v43  ;;  %v675_v21 = vsel %vm673_vm5, %v663_v44, 2102212464  ;;  %v694_v0 = vmul.u32 %v690_v9, %v688_v10  ;;  %v695_v15 = vshll.u32 %v692_v16, 16 }
  0xac   : > { %v697_v57 = vshll.u32 %v693_v50, 16  ;;  %v446_v22 = vand.u32 2147483647, %v445_v46  ;;  %v674_v35 = vsel %vm670_vm3, %v654_v25, %v3428_v48  ;;  %v719_v17 = vshll.u32 %v715_v8, 16 }
  0xad   : > { %vm721_vm10 = vc.u32 %v713_v33, %v717_v45  ;;  %v589_v30 = vclz %v588_v6  ;;  %vm699_vm11 = vc.u32 %v691_v56, %v695_v15  ;;  %v701_v31 = vadd.s32 %v695_v15, %v691_v56 }
  0xae   : > { %v722_v23 = vsel %vm721_vm10, 1, %v4533_v58  ;;  %v676_v5 = vsel %vm672_vm4, %v3430_v60, %v675_v21  ;;  %v700_v44 = vsel %vm699_vm11, 1, %v4533_v58  ;;  %v723_v10 = vadd.s32 %v717_v45, %v713_v33 }
  0xaf   : > { %v724_v32 = vadd.s32 %v722_v23, %v716_v53  ;;  %v696_v41 = vshrl.u32 %v692_v16, 16  ;;  %v702_v43 = vadd.s32 %v700_v44, %v694_v0  ;;  %vm703_vm12 = vc.u32 %v701_v31, %v697_v57 }
  0xb0   : > { %vm804_vm13 = vcmp.gt.s32.totalorder %v803_v63, 0  ;;  %v704_v48 = vsel %vm703_vm12, 1, %v4533_v58  ;;  %v718_v46 = vshrl.u32 %v714_v47, 16  ;;  %vm725_vm14 = vc.u32 %v723_v10, %v719_v17 }
  0xb1   : > { %v805_v25 = vsel %vm804_vm13, %v803_v63, 0  ;;  %v698_v9 = vshrl.u32 %v693_v50, 16  ;;  %v706_v56 = vadd.s32 %v704_v48, %v702_v43  ;;  %v726_v6 = vsel %vm725_vm14, 1, %v4533_v58 }
  0xb2   : > { %v4520_v15 = vand.u32 2147483647, %v3422_v20  ;;  %v2783_v60 = vadd.s32 4294967294, %v589_v30  ;;  %v720_v21 = vshrl.u32 %v715_v8, 16  ;;  %v728_v2 = vadd.s32 %v726_v6, %v724_v32 }
  0xb3   : > { %v807_v33 = vand.u32 31, %v805_v25  ;;  %v154_v16 = vcvt.s32.f32 %v3457_v59  ;;  %v677_v53 = vsel %vm671_vm6, %v674_v35, %v676_v5  ;;  %v707_v45 = vadd.s32 %v706_v56, %v696_v41 }
  0xb4   : > { %v3512_v0 = vadd.s32 %v723_v10, %v719_v17  ;;  %v155_v47 = vcvt.s32.f32 %v3468_v19  ;;  %vm330_vm15 = vcmp.lt.s32.totalorder %v3124_v13, 0  ;;  %v729_v50 = vadd.s32 %v728_v2, %v718_v46 }
  0xb5   : > { %v3516_v63 = vsub.s32 32, %v807_v33  ;;  %v3521_v8 = vsel %vm3491_vm9, %v3121_v12, %v296_v3  ;;  %v449_v57 = vmul.f32 %v448_v4, %v446_v22  ;;  %v3523_v30 = vadd.s32 %v707_v45, %v698_v9 }
  0xb6   : > { %v800_v18 = vand.u32 8388607, %v4520_v15  ;;  %vm2784_vm0 = vcmp.lt.s32.totalorder %v2783_v60, 0  ;;  %v730_v35 = vadd.s32 %v729_v50, %v720_v21  ;;  %v731_v17 = vmul.u32 %v3441_v49, %v677_v53 }
  0xb7   : > { %v810_v31 = vshll.u32 %v4544_v34, %v807_v33  ;;  %vm733_vm1 = vc.u32 %v3523_v30, %v3512_v0  ;;  %v811_v2 = vshrl.u32 %v4530_v36, %v3516_v63  ;;  %v813_v3 = vshll.u32 %v4530_v36, %v807_v33 }
  0xb8   : > { %v814_v4 = vshrl.u32 %v4526_v38, %v3516_v63  ;;  %v734_v22 = vadd.s32 1, %v730_v35  ;;  %v3536_v23 = vshrl.u32 %v805_v25, 5  ;;  %v816_v5 = vshll.u32 %v4526_v38, %v807_v33 }
  0xb9   : > { %v817_v49 = vshrl.u32 %v4528_v40, %v3516_v63  ;;  %v3543_v44 = vmul.f32 %v3521_v8, %v3521_v8  ;;  %v450_v10 = vxor.u32 2147483648, %v449_v57  ;;  %v819_v32 = vshll.u32 %v4528_v40, %v807_v33 }
  0xba   : > { %v820_v41 = vshrl.u32 %v4524_v42, %v3516_v63  ;;  %v735_v43 = vsel %vm733_vm1, %v734_v22, %v730_v35  ;;  %v801_v48 = vor.u32 8388608, %v800_v18  ;;  %v822_v46 = vshll.u32 %v4524_v42, %v807_v33 }
  0xbb   : > { %v823_v25 = vshrl.u32 %v4522_v51, %v3516_v63  ;;  %v592_v9 = vsel %vm2784_vm0, 0, %v2783_v60  ;;  %v3552_v56 = vadd.s32 %v735_v43, %v731_v17  ;;  %v3554_v6 = vor.u32 %v811_v2, %v810_v31 }
  0xbc   : > { %v3556_v21 = vor.u32 %v814_v4, %v813_v3  ;;  %v3558_v53 = vor.u32 %v817_v49, %v816_v5  ;;  %v821_v45 = vor.u32 %v820_v41, %v819_v32  ;;  %vm825_vm2 = vcmp.lt.s32.totalorder %v3536_v23, 1 }
  0xbd   : > { %v824_v50 = vor.u32 %v823_v25, %v822_v46  ;;  %v309_v18 = vmul.f32 -0.00019511016, %v3543_v44  ;;  %vm3564_vm3 = vcmp.le.f32.partialorder %v328_v28, 0.7853982  ;;  %vm827_vm4 = vcmp.lt.s32.totalorder %v3536_v23, 3 }
  0xbe   : > { %vm828_vm5 = vcmp.lt.s32.totalorder %v3536_v23, 4  ;;  %v297_v60 = vsub.s32 4, %v3319_v24  ;;  %v451_v35 = vsel %vm330_vm15, %v450_v10, %v449_v57  ;;  %v597_v17 = vsub.s32 4294967266, %v592_v9 }
  0xbf   : > { %v834_v31 = vsel %vm828_vm5, %v821_v45, 920167782  ;;  %v302_v2 = vmul.f32 -0.001358992, %v3543_v44  ;;  %v737_v28 = vadd.s32 536870912, %v3552_v56  ;;  %vm826_vm6 = vcmp.lt.s32.totalorder %v3536_v23, 2 }
  0xc0   : > { %v833_v3 = vsel %vm825_vm2, %v3554_v6, %v3556_v21  ;;  %v452_v4 = vsub.s32 4, %v3362_v7  ;;  %v835_v57 = vsel %vm827_vm4, %v3558_v53, %v834_v31  ;;  %v838_v22 = vsel %vm828_vm5, %v824_v50, 1326507024 }
  0xc1   : > { %v3588_v5 = vshll.u32 %v801_v48, 8  ;;  %v310_v49 = vadd.f32 0.008332121, %v309_v18  ;;  %v3593_v10 = vsel %vm3564_vm3, %v3124_v13, %v451_v35  ;;  %v577_v32 = vadd.s32 %v3393_v55, %v3391_v54 }
  0xc2   : > { %v837_v41 = vsel %vm825_vm2, %v3556_v21, %v3558_v53  ;;  %v593_v43 = vsub.s32 32, %v592_v9  ;;  %v598_v46 = vadd.s32 127, %v597_v17  ;;  %v836_v48 = vsel %vm826_vm6, %v833_v3, %v835_v57 }
  0xc3   : > { %v839_v25 = vsel %vm827_vm4, %v821_v45, %v838_v22  ;;  %v3608_v50 = vmul.f32 %v3118_v11, %v153_v29  ;;  %v298_v54 = vsel %vm175_vm7, %v297_v60, %v3319_v24  ;;  %v303_v55 = vadd.f32 0.041655596, %v302_v2 }
  0xc4   : > { %v3613_v18 = vshrl.u32 %v737_v28, 30  ;;  %v453_v35 = vsel %vm330_vm15, %v452_v4, %v3362_v7  ;;  %v840_v17 = vsel %vm826_vm6, %v837_v41, %v839_v25  ;;  %v842_v45 = vand.u32 65535, %v3588_v5 }
  0xc5   : > { %v867_v39 = vshrl.u32 %v836_v48, 16  ;;  %v311_v29 = vmul.f32 %v310_v49, %v3543_v44  ;;  %v3624_v31 = vmul.f32 %v3593_v10, %v3593_v10  ;;  %v594_v24 = vshll.u32 %v3460_v62, %v592_v9 }
  0xc6   : > { %v843_v60 = vshrl.u32 %v3588_v5, 16  ;;  %v595_v2 = vshrl.u32 %v577_v32, %v593_v43  ;;  %v599_v28 = vshll.u32 %v598_v46, 23  ;;  %v844_v3 = vand.u32 65535, %v840_v17 }
  0xc7   : > { %v845_v7 = vshrl.u32 %v840_v17, 16  ;;  %v3630_v4 = vsel %vm3491_vm9, 0, %v298_v54  ;;  %v304_v57 = vmul.f32 %v303_v55, %v3543_v44  ;;  %v739_v22 = vshll.u32 %v3613_v18, 30 }
  0xc8   : > { %4574 = vst [vmem:[#allocation9_spill] sm:$0xff] %v3630_v4  ;;  %v866_v49 = vand.u32 65535, %v836_v48  ;;  %v3636_v41 = vsel %vm3564_vm3, 0, %v453_v35  ;;  %v846_v62 = vmul.u32 %v844_v3, %v842_v45  ;;  %v869_v25 = vmul.u32 %v867_v39, %v842_v45 }
  0xc9   : > { %4575 = vst [vmem:[#allocation10_spill] sm:$0xff] %v3636_v41  ;;  %v847_v9 = vmul.u32 %v845_v7, %v842_v45  ;;  %v312_v32 = vadd.f32 -0.16666654, %v311_v29  ;;  %v457_v43 = vmul.f32 -0.001358992, %v3624_v31  ;;  %v848_v52 = vmul.u32 %v844_v3, %v843_v60 }
  0xca   : > { %v464_v46 = vmul.f32 -0.00019511016, %v3624_v31  ;;  %v596_v54 = vor.u32 %v595_v2, %v594_v24  ;;  %v600_v17 = vor.u32 4788187, %v599_v28  ;;  %v849_v15 = vmul.u32 %v845_v7, %v843_v60 }
  0xcb   : > { %v850_v55 = vshll.u32 %v847_v9, 16  ;;  %v305_v61 = vadd.f32 -0.4999988, %v304_v57  ;;  %v3641_v48 = vsub.s32 %v3552_v56, %v739_v22  ;;  %v852_v33 = vshll.u32 %v848_v52, 16 }
  0xcc   : > { %v870_v35 = vmul.u32 %v866_v49, %v843_v60  ;;  %v868_v42 = vmul.u32 %v866_v49, %v842_v45  ;;  %v872_v38 = vshll.u32 %v869_v25, 16  ;;  %v313_v29 = vmul.f32 %v312_v32, %v3543_v44 }
  0xcd   : > { %vm854_vm7 = vc.u32 %v846_v62, %v850_v55  ;;  %v856_v51 = vadd.s32 %v850_v55, %v846_v62  ;;  %v458_v40 = vadd.f32 0.041655596, %v457_v43  ;;  %v465_v36 = vadd.f32 0.008332121, %v464_v46 }
  0xce   : > { %v855_v3 = vsel %vm854_vm7, 1, %v4533_v58  ;;  %v601_v24 = vand.u32 2147483647, %v600_v17  ;;  %v603_v2 = vcvt.s32.f32 %v596_v54  ;;  %v871_v7 = vmul.u32 %v867_v39, %v843_v60 }
  0xcf   : > { %v857_v28 = vadd.s32 %v855_v3, %v849_v15  ;;  %v742_v57 = vsub.s32 0, %v3641_v48  ;;  %v851_v56 = vshrl.u32 %v847_v9, 16  ;;  %vm858_vm8 = vc.u32 %v856_v51, %v852_v33 }
  0xd0   : > { %v874_v22 = vshll.u32 %v870_v35, 16  ;;  %vm741_vm9 = vcmp.lt.s32.totalorder %v3641_v48, 0  ;;  %v809_v45 = vshrl.u32 %v4544_v34, %v3516_v63  ;;  %v859_v49 = vsel %vm858_vm8, 1, %v4533_v58 }
  0xd1   : > { %vm876_vm10 = vc.u32 %v868_v42, %v872_v38  ;;  %v830_v62 = vsel %vm828_vm5, %v3558_v53, 2102212464  ;;  %v861_v32 = vadd.s32 %v859_v49, %v857_v28  ;;  %v878_v39 = vadd.s32 %v872_v38, %v868_v42 }
  0xd2   : > { %v877_v15 = vsel %vm876_vm10, 1, %v4533_v58  ;;  %v459_v60 = vmul.f32 %v458_v40, %v3624_v31  ;;  %v853_v51 = vshrl.u32 %v848_v52, 16  ;;  %v951_v43 = vand.u32 2139095040, %v3608_v50 }
  0xd3   : > { %v879_v9 = vadd.s32 %v877_v15, %v871_v7  ;;  %v743_v46 = vsel %vm741_vm9, %v742_v57, %v3641_v48  ;;  %v862_v63 = vadd.s32 %v861_v32, %v851_v56  ;;  %v873_v54 = vshrl.u32 %v869_v25, 16 }
  0xd4   : > { %vm880_vm11 = vc.u32 %v878_v39, %v874_v22  ;;  %v829_v17 = vsel %vm825_vm2, %v809_v45, %v3554_v6  ;;  %v831_v53 = vsel %vm827_vm4, %v3556_v21, %v830_v62  ;;  %v952_v40 = vshrl.u32 %v951_v43, 23 }
  0xd5   : > { %v881_v38 = vsel %vm880_vm11, 1, %v4533_v58  ;;  %v306_v42 = vmul.f32 %v305_v61, %v3543_v44  ;;  %v604_v52 = vmul.f32 %v603_v2, %v601_v24  ;;  %v875_v55 = vshrl.u32 %v870_v35, 16 }
  0xd6   : > { %v883_v33 = vadd.s32 %v881_v38, %v879_v9  ;;  %v744_v3 = vclz %v743_v46  ;;  %v3665_v28 = vadd.s32 %v862_v63, %v853_v51  ;;  %v3667_v25 = vadd.s32 %v878_v39, %v874_v22 }
  0xd7   : > { %v2791_v7 = vadd.s32 4294967169, %v952_v40  ;;  %v314_v57 = vadd.f32 1.0, %v313_v29  ;;  %v466_v6 = vmul.f32 %v465_v36, %v3624_v31  ;;  %v832_v21 = vsel %vm826_vm6, %v829_v17, %v831_v53 }
  0xd8   : > { %v884_v56 = vadd.s32 %v883_v33, %v873_v54  ;;  %v317_v45 = vadd.s32 3, %v3630_v4  ;;  %v460_v49 = vadd.f32 -0.4999988, %v459_v60  ;;  %vm485_vm12 = vcmp.lt.s32.totalorder %v3133_v26, 0 }
  0xd9   : > { %v958_v61 = vadd.s32 1, %v2791_v7  ;;  %v3674_v44 = vadd.f32 1.0, %v306_v42  ;;  %v472_v35 = vadd.s32 3, %v3636_v41  ;;  %v605_v24 = vxor.u32 2147483648, %v604_v52 }
  0xda   : > { %v885_v2 = vadd.s32 %v884_v56, %v875_v55  ;;  %v2786_v22 = vadd.s32 4294967294, %v744_v3  ;;  %v886_v29 = vmul.u32 %v3588_v5, %v832_v21  ;;  %vm888_vm13 = vc.u32 %v3665_v28, %v3667_v25 }
  0xdb   : > { %4576 = vst [vmem:[#allocation11_spill] sm:$0xff] %v3674_v44  ;;  %vm959_vm14 = vcmp.gt.s32.totalorder %v958_v61, 0  ;;  %v3681_v36 = vmul.f32 %v314_v57, %v3521_v8  ;;  %v467_v23 = vadd.f32 -0.16666654, %v466_v6  ;;  %v3686_v15 = vmul.f32 %v3118_v11, %v154_v16 }
  0xdc   : > { %v889_v62 = vadd.s32 1, %v885_v2  ;;  %v960_v32 = vsel %vm959_vm14, %v958_v61, 0  ;;  %v3691_v39 = vmul.f32 %v3118_v11, %v155_v47  ;;  %v461_v5 = vmul.f32 %v460_v49, %v3624_v31 }
  0xdd   : > { %4577 = vst [vmem:[#allocation12_spill] sm:$0xff] %v3681_v36  ;;  %v962_v60 = vand.u32 31, %v960_v32  ;;  %v3694_v51 = vand.u32 3, %v317_v45  ;;  %vm3698_vm15 = vcmp.le.f32.partialorder %v483_v27, 0.7853982  ;;  %v606_v59 = vsel %vm485_vm12, %v605_v24, %v604_v52 }
  0xde   : > { %4578 = vst [vmem:[#allocation13_spill] sm:$0xff] %v3691_v39  ;;  %v890_v16 = vsel %vm888_vm13, %v889_v62, %v885_v2  ;;  %v3704_v9 = vand.u32 3, %v472_v35  ;;  %vm2787_vm0 = vcmp.lt.s32.totalorder %v2786_v22, 0  ;;  %v4536_v47 = vxor.u32 2147483648, %v3681_v36 }
  0xdf   : > { %v891_v11 = vadd.s32 %v890_v16, %v886_v29  ;;  %v3706_v19 = vsub.s32 32, %v962_v60  ;;  %v4535_v43 = vxor.u32 2147483648, %v3674_v44  ;;  %v468_v46 = vmul.f32 %v467_v23, %v3624_v31 }
  0xe0   : > { %v4532_v27 = vand.u32 2147483647, %v3608_v50  ;;  %v3712_v63 = vadd.f32 1.0, %v461_v5  ;;  %v607_v54 = vsub.s32 4, %v3426_v14  ;;  %v3718_v17 = vsel %vm3698_vm15, %v3133_v26, %v606_v59 }
  0xe1   : > { %v892_v53 = vadd.s32 536870912, %v891_v11  ;;  %v747_v38 = vsel %vm2787_vm0, 0, %v2786_v22  ;;  %v965_v40 = vshll.u32 %v4544_v34, %v962_v60  ;;  %v4582_v42 = vmov 2475754826  }
  0xe2   : > { %4581 = vst [vmem:[#allocation14_spill] sm:$0xff] %v3712_v63  ;;  %v968_v52 = vshll.u32 %v4582_v42, %v962_v60  ;;  %v4583_v55 = vmov 2102212464   ;;  %v966_v3 = vshrl.u32 %v4582_v42, %v3706_v19  ;;  %v4584_v7 = vmov 2131351028  }
  0xe3   : > { %v974_v33 = vshll.u32 %v4583_v55, %v962_v60  ;;  %v3723_v31 = vshrl.u32 %v892_v53, 30  ;;  %v969_v57 = vshrl.u32 %v4584_v7, %v3706_v19  ;;  %v4585_v6 = vmov 920167782  }
  0xe4   : > { %v975_v21 = vshrl.u32 %v4585_v6, %v3706_v19  ;;  %v955_v56 = vand.u32 8388607, %v4532_v27  ;;  %v3733_v45 = vshrl.u32 %v960_v32, 5  ;;  %v971_v49 = vshll.u32 %v4584_v7, %v962_v60 }
  0xe5   : > { %v972_v61 = vshrl.u32 %v4583_v55, %v3706_v19  ;;  %v469_v35 = vadd.f32 1.0, %v468_v46  ;;  %v3740_v24 = vmul.f32 %v3718_v17, %v3718_v17  ;;  %v894_v2 = vshll.u32 %v3723_v31, 30 }
  0xe6   : > { %v977_v22 = vshll.u32 %v4585_v6, %v962_v60  ;;  %vm323_vm1 = vcmp.eq.s32.totalorder %v3694_v51, 2  ;;  %v732_v29 = vadd.s32 %v3512_v0, %v3523_v30  ;;  %v748_v23 = vsub.s32 32, %v747_v38 }
  0xe7   : > { %v976_v62 = vor.u32 %v975_v21, %v974_v33  ;;  %v4586_v32 = vmov 1326507024   ;;  %vm320_vm2 = vcmp.eq.s32.totalorder %v3694_v51, 0  ;;  %vm478_vm3 = vcmp.eq.s32.totalorder %v3704_v9, 2 }
  0xe8   : > { %v978_v5 = vshrl.u32 %v4586_v32, %v3706_v19  ;;  %v752_v59 = vsub.s32 4294967266, %v747_v38  ;;  %v3751_v16 = vsub.s32 %v891_v11, %v894_v2  ;;  %v3753_v46 = vor.u32 %v966_v3, %v965_v40 }
  0xe9   : > { %v3755_v60 = vor.u32 %v969_v57, %v968_v52  ;;  %v956_v53 = vor.u32 8388608, %v955_v56  ;;  %v3757_v27 = vor.u32 %v972_v61, %v971_v49  ;;  %vm980_vm4 = vcmp.lt.s32.totalorder %v3733_v45, 1 }
  0xea   : > { %vm983_vm5 = vcmp.lt.s32.totalorder %v3733_v45, 4  ;;  %v619_v0 = vmul.f32 -0.00019511016, %v3740_v24  ;;  %v897_v30 = vsub.s32 0, %v3751_v16  ;;  %v979_v33 = vor.u32 %v978_v5, %v977_v22 }
  0xeb   : > { %vm982_vm6 = vcmp.lt.s32.totalorder %v3733_v45, 3  ;;  %v749_v11 = vshll.u32 %v3641_v48, %v747_v38  ;;  %v750_v40 = vshrl.u32 %v732_v29, %v748_v23  ;;  %vm896_vm7 = vcmp.lt.s32.totalorder %v3751_v16, 0 }
  0xec   : > { %v989_v52 = vsel %vm983_vm5, %v976_v62, 920167782  ;;  %v753_v3 = vadd.s32 127, %v752_v59  ;;  %vm981_vm8 = vcmp.lt.s32.totalorder %v3733_v45, 2  ;;  %v988_v57 = vsel %vm980_vm4, %v3753_v46, %v3755_v60 }
  0xed   : > { %v1106_v21 = vand.u32 2139095040, %v3686_v15  ;;  %v608_v48 = vsel %vm485_vm12, %v607_v54, %v3426_v14  ;;  %v990_v38 = vsel %vm982_vm6, %v3757_v27, %v989_v52  ;;  %v992_v56 = vsel %vm980_vm4, %v3755_v60, %v3757_v27 }
  0xee   : > { %v3784_v49 = vshll.u32 %v956_v53, 8  ;;  %v3787_v61 = vmul.f32 %v469_v35, %v3593_v10  ;;  %v4537_v2 = vxor.u32 2147483648, %v3712_v63  ;;  %v898_v22 = vsel %vm896_vm7, %v897_v30, %v3751_v16 }
  0xef   : > { %v993_v14 = vsel %vm983_vm5, %v979_v33, 1326507024  ;;  %v612_v54 = vmul.f32 -0.001358992, %v3740_v24  ;;  %v620_v29 = vadd.f32 0.008332121, %v619_v0  ;;  %v991_v23 = vsel %vm981_vm8, %v988_v57, %v990_v38 }
  0xf0   : > { %4587 = vst [vmem:[#allocation15_spill] sm:$0xff] %v3787_v61  ;;  %v994_v5 = vsel %vm982_vm6, %v976_v62, %v993_v14  ;;  %v751_v59 = vor.u32 %v750_v40, %v749_v11  ;;  %v754_v53 = vshll.u32 %v753_v3, 23  ;;  %v1107_v35 = vshrl.u32 %v1106_v21, 23 }
  0xf1   : > { %v995_v10 = vsel %vm981_vm8, %v992_v56, %v994_v5  ;;  %v899_v52 = vclz %v898_v22  ;;  %v997_v30 = vand.u32 65535, %v3784_v49  ;;  %v3806_v0 = vsel %vm323_vm1, %v4535_v43, %v3681_v36 }
  0xf2   : > { %v999_v58 = vand.u32 65535, %v995_v10  ;;  %v1000_v33 = vshrl.u32 %v995_v10, 16  ;;  %v998_v62 = vshrl.u32 %v3784_v49, 16  ;;  %v1021_v11 = vand.u32 65535, %v991_v23 }
  0xf3   : > { %v1022_v40 = vshrl.u32 %v991_v23, 16  ;;  %v3814_v3 = vsel %vm320_vm2, %v3674_v44, %v4536_v47  ;;  %v3822_v21 = vsel %vm478_vm3, %v4537_v2, %v3787_v61  ;;  %v3826_v38 = vsel %vm3698_vm15, 0, %v608_v48 }
  0xf4   : > { %4588 = vst [vmem:[#allocation16_spill] sm:$0xff] %v3826_v38  ;;  %v613_v56 = vadd.f32 0.041655596, %v612_v54  ;;  %v621_v22 = vmul.f32 %v620_v29, %v3740_v24  ;;  %v755_v14 = vor.u32 4788187, %v754_v53  ;;  %v2794_v23 = vadd.s32 4294967169, %v1107_v35 }
  0xf5   : > { %vm475_vm9 = vcmp.eq.s32.totalorder %v3704_v9, 0  ;;  %v758_v5 = vcvt.s32.f32 %v751_v59  ;;  %v2789_v10 = vadd.s32 4294967294, %v899_v52  ;;  %v1001_v43 = vmul.u32 %v999_v58, %v997_v30 }
  0xf6   : > { %v1002_v47 = vmul.u32 %v1000_v33, %v997_v30  ;;  %v964_v57 = vshrl.u32 %v4544_v34, %v3706_v19  ;;  %v1003_v2 = vmul.u32 %v999_v58, %v998_v62  ;;  %v1024_v1 = vmul.u32 %v1022_v40, %v997_v30 }
  0xf7   : > { %v1025_v44 = vmul.u32 %v1021_v11, %v998_v62  ;;  %v1004_v8 = vmul.u32 %v1000_v33, %v998_v62  ;;  %v1023_v36 = vmul.u32 %v1021_v11, %v997_v30  ;;  %v756_v29 = vand.u32 2147483647, %v755_v14 }
  0xf8   : > { %v1005_v48 = vshll.u32 %v1002_v47, 16  ;;  %v1007_v53 = vshll.u32 %v1003_v2, 16  ;;  %v1027_v35 = vshll.u32 %v1024_v1, 16  ;;  %v1113_v41 = vadd.s32 1, %v2794_v23 }
  0xf9   : > { %vm2790_vm10 = vcmp.lt.s32.totalorder %v2789_v10, 0  ;;  %v1026_v52 = vmul.u32 %v1022_v40, %v998_v62  ;;  %v984_v19 = vsel %vm980_vm4, %v964_v57, %v3753_v46  ;;  %v985_v58 = vsel %vm983_vm5, %v3757_v27, 2102212464 }
  0xfa   : > { %vm1009_vm11 = vc.u32 %v1001_v43, %v1005_v48  ;;  %v1011_v59 = vadd.s32 %v1005_v48, %v1001_v43  ;;  %v4589_v33 = vmov 0   ;;  %v1029_v11 = vshll.u32 %v1025_v44, 16 }
  0xfb   : > { %v1010_v30 = vsel %vm1009_vm11, 1, %v4589_v33  ;;  %v1006_v34 = vshrl.u32 %v1002_v47, 16  ;;  %vm1031_vm13 = vc.u32 %v1023_v36, %v1027_v35  ;;  %v3840_v23 = vsel %vm2790_vm10, 0, %v2789_v10 }
  0xfc   : > { %v1012_v14 = vadd.s32 %v1010_v30, %v1004_v8  ;;  %vm1013_vm12 = vc.u32 %v1011_v59, %v1007_v53  ;;  %v1032_v62 = vsel %vm1031_vm13, 1, %v4589_v33  ;;  %v1033_v40 = vadd.s32 %v1027_v35, %v1023_v36 }
  0xfd   : > { %v1014_v43 = vsel %vm1013_vm12, 1, %v4589_v33  ;;  %v1008_v48 = vshrl.u32 %v1003_v2, 16  ;;  %v1034_v57 = vadd.s32 %v1032_v62, %v1026_v52  ;;  %vm1114_vm14 = vcmp.gt.s32.totalorder %v1113_v41, 0 }
  0xfe   : > { %v1016_v46 = vadd.s32 %v1014_v43, %v1012_v14  ;;  %v986_v27 = vsel %vm982_vm6, %v3755_v60, %v985_v58  ;;  %v1028_v54 = vshrl.u32 %v1024_v1, 16  ;;  %vm1035_vm15 = vc.u32 %v1033_v40, %v1029_v11 }
  0xff   : > { %v1115_v47 = vsel %vm1114_vm14, %v1113_v41, 0  ;;  %v3847_v8 = vmul.f32 %v758_v5, %v756_v29  ;;  %v907_v10 = vsub.s32 4294967266, %v3840_v23  ;;  %v1036_v59 = vsel %vm1035_vm15, 1, %v4589_v33 }
 0x100   : > { %v1017_v53 = vadd.s32 %v1016_v46, %v1006_v34  ;;  %v4590_v36 = vxor.u32 2147483648, %v3787_v61  ;;  %v1030_v35 = vshrl.u32 %v1025_v44, 16  ;;  %v1038_v52 = vadd.s32 %v1036_v59, %v1034_v57 }
 0x101   : > { %v1117_v60 = vand.u32 31, %v1115_v47  ;;  %v614_v1 = vmul.f32 %v613_v56, %v3740_v24  ;;  %v987_v41 = vsel %vm981_vm8, %v984_v19, %v986_v27  ;;  %v3863_v34 = vadd.s32 %v1033_v40, %v1029_v11 }
 0x102   : > { %v3856_v2 = vsel %vm475_vm9, %v3712_v63, %v4590_v36  ;;  %v3861_v5 = vadd.s32 %v1017_v53, %v1008_v48  ;;  %v622_v29 = vadd.f32 -0.16666654, %v621_v22  ;;  %v887_v58 = vadd.s32 %v3667_v25, %v3665_v28 }
 0x103   : > { %v1039_v30 = vadd.s32 %v1038_v52, %v1028_v54  ;;  %v3867_v14 = vsub.s32 32, %v1117_v60  ;;  %v760_v44 = vxor.u32 2147483648, %v3847_v8  ;;  %v903_v43 = vsub.s32 32, %v3840_v23 }
 0x104   : > { %v908_v62 = vadd.s32 127, %v907_v10  ;;  %v4591_v56 = vand.u32 2147483647, %v3686_v15  ;;  %vm319_vm0 = vcmp.lt.s32.totalorder %v3694_v51, 2  ;;  %vm474_vm1 = vcmp.lt.s32.totalorder %v3704_v9, 2 }
 0x105   : > { %v1040_v19 = vadd.s32 %v1039_v30, %v1030_v35  ;;  %v1041_v22 = vmul.u32 %v3784_v49, %v987_v41  ;;  %v3876_v11 = vshrl.u32 %v1115_v47, 5  ;;  %v4592_v28 = vmov 683565275  }
 0x106   : > { %v1110_v45 = vand.u32 8388607, %v4591_v56  ;;  %v1120_v25 = vshll.u32 %v4592_v28, %v1117_v60  ;;  %vm1043_vm2 = vc.u32 %v3861_v5, %v3863_v34  ;;  %v1121_v54 = vshrl.u32 %v4582_v42, %v3867_v14 }
 0x107   : > { %v1123_v40 = vshll.u32 %v4582_v42, %v1117_v60  ;;  %v1124_v48 = vshrl.u32 %v4584_v7, %v3867_v14  ;;  %v1044_v46 = vadd.s32 1, %v1040_v19  ;;  %v1126_v57 = vshll.u32 %v4584_v7, %v1117_v60 }
 0x108   : > { %v1127_v49 = vshrl.u32 %v4583_v55, %v3867_v14  ;;  %v1129_v27 = vshll.u32 %v4583_v55, %v1117_v60  ;;  %v904_v47 = vshll.u32 %v3751_v16, %v3840_v23  ;;  %v905_v10 = vshrl.u32 %v887_v58, %v903_v43 }
 0x109   : > { %v1111_v53 = vor.u32 8388608, %v1110_v45  ;;  %v1130_v59 = vshrl.u32 %v4585_v6, %v3867_v14  ;;  %v909_v36 = vshll.u32 %v908_v62, 23  ;;  %v1045_v35 = vsel %vm1043_vm2, %v1044_v46, %v1040_v19 }
 0x10a   : > { %v1132_v52 = vshll.u32 %v4585_v6, %v1117_v60  ;;  %v1133_v41 = vshrl.u32 %v4586_v32, %v3867_v14  ;;  %v1046_v30 = vadd.s32 %v1045_v35, %v1041_v22  ;;  %v3897_v56 = vor.u32 %v1121_v54, %v1120_v25 }
 0x10b   : > { %v3899_v63 = vor.u32 %v1124_v48, %v1123_v40  ;;  %vm1135_vm3 = vcmp.lt.s32.totalorder %v3876_v11, 1  ;;  %v3902_v16 = vor.u32 %v1127_v49, %v1126_v57  ;;  %v1131_v23 = vor.u32 %v1130_v59, %v1129_v27 }
 0x10c   : > { %v1134_v58 = vor.u32 %v1133_v41, %v1132_v52  ;;  %vm1138_vm4 = vcmp.lt.s32.totalorder %v3876_v11, 4  ;;  %v4593_v43 = vand.u32 2147483647, %v3375_v37  ;;  %vm640_vm6 = vcmp.lt.s32.totalorder %v3375_v37, 0 }
 0x10d   : > { %v1047_v62 = vadd.s32 536870912, %v1046_v30  ;;  %vm1137_vm7 = vcmp.lt.s32.totalorder %v3876_v11, 3  ;;  %v615_v45 = vadd.f32 -0.4999988, %v614_v1  ;;  %v623_v19 = vmul.f32 %v622_v29, %v3740_v24 }
 0x10e   : > { %vm3907_vm5 = vcmp.le.f32.partialorder %v4593_v43, 0.7853982  ;;  %v906_v22 = vor.u32 %v905_v10, %v904_v47  ;;  %v1144_v25 = vsel %vm1138_vm4, %v1131_v23, 920167782  ;;  %v910_v54 = vor.u32 4788187, %v909_v36 }
 0x10f   : > { %v3916_v40 = vshrl.u32 %v1047_v62, 30  ;;  %vm1136_vm8 = vcmp.lt.s32.totalorder %v3876_v11, 2  ;;  %v1143_v48 = vsel %vm1135_vm3, %v3897_v56, %v3899_v63  ;;  %v761_v1 = vsel %vm640_vm6, %v760_v44, %v3847_v8 }
 0x110   : > { %v1145_v29 = vsel %vm1137_vm7, %v3902_v16, %v1144_v25  ;;  %v1148_v46 = vsel %vm1138_vm4, %v1134_v58, 1326507024  ;;  %v3931_v57 = vshll.u32 %v1111_v53, 8  ;;  %v3937_v49 = vsel %vm319_vm0, %v3814_v3, %v3806_v0 }
 0x111   : > { %v3943_v8 = vsel %vm474_vm1, %v3856_v2, %v3822_v21  ;;  %v1049_v44 = vshll.u32 %v3916_v40, 30  ;;  %v1147_v27 = vsel %vm1135_vm3, %v3899_v63, %v3902_v16  ;;  %v616_v47 = vmul.f32 %v615_v45, %v3740_v24 }
 0x112   : > { %4596 = vst [vmem:[#allocation17_spill] sm:$0xff] %v3943_v8  ;;  %v627_v10 = vadd.s32 3, %v3826_v38  ;;  %v1146_v51 = vsel %vm1136_vm8, %v1143_v48, %v1145_v29  ;;  %v1149_v0 = vsel %vm1137_vm7, %v1131_v23, %v1148_v46  ;;  %v3959_v9 = vsel %vm3907_vm5, %v3375_v37, %v761_v1 }
 0x113   : > { %v911_v3 = vand.u32 2147483647, %v910_v54  ;;  %v913_v21 = vcvt.s32.f32 %v906_v22  ;;  %v3961_v2 = vsub.s32 %v1046_v30, %v1049_v44  ;;  %v624_v53 = vadd.f32 1.0, %v623_v19 }
 0x114   : > { %v1150_v24 = vsel %vm1136_vm8, %v1147_v27, %v1149_v0  ;;  %v1152_v59 = vand.u32 65535, %v3931_v57  ;;  %v1177_v36 = vshrl.u32 %v1146_v51, 16  ;;  %v762_v35 = vsub.s32 4, %v3613_v18 }
 0x115   : > { %vm1051_vm9 = vcmp.lt.s32.totalorder %v3961_v2, 0  ;;  %v1052_v52 = vsub.s32 0, %v3961_v2  ;;  %v1153_v41 = vshrl.u32 %v3931_v57, 16  ;;  %v3970_v23 = vand.u32 3, %v627_v10 }
 0x116   : > { %v3974_v30 = vmul.f32 %v3959_v9, %v3959_v9  ;;  %v1154_v58 = vand.u32 65535, %v1150_v24  ;;  %v1155_v43 = vshrl.u32 %v1150_v24, 16  ;;  %v3976_v62 = vadd.f32 1.0, %v616_v47 }
 0x117   : > { %vm795_vm10 = vcmp.lt.s32.totalorder %v3422_v20, 0  ;;  %v914_v45 = vmul.f32 %v913_v21, %v911_v3  ;;  %v1053_v19 = vsel %vm1051_vm9, %v1052_v52, %v3961_v2  ;;  %v1176_v22 = vand.u32 65535, %v1146_v51 }
 0x118   : > { %4597 = vst [vmem:[#allocation18_spill] sm:$0xff] %v3976_v62  ;;  %v1054_v25 = vclz %v1053_v19  ;;  %v1156_v54 = vmul.u32 %v1154_v58, %v1152_v59  ;;  %v1157_v48 = vmul.u32 %v1155_v43, %v1152_v59  ;;  %v1179_v1 = vmul.u32 %v1177_v36, %v1152_v59 }
 0x119   : > { %v3981_v29 = vmul.f32 %v624_v53, %v3718_v17  ;;  %v763_v46 = vsel %vm640_vm6, %v762_v35, %v3613_v18  ;;  %v767_v44 = vmul.f32 -0.001358992, %v3974_v30  ;;  %v1158_v27 = vmul.u32 %v1154_v58, %v1153_v41 }
 0x11a   : > { %v774_v47 = vmul.f32 -0.00019511016, %v3974_v30  ;;  %v2792_v10 = vadd.s32 4294967294, %v1054_v25  ;;  %v1159_v0 = vmul.u32 %v1155_v43, %v1153_v41  ;;  %v1160_v3 = vshll.u32 %v1157_v48, 16 }
 0x11b   : > { %4598 = vst [vmem:[#allocation19_spill] sm:$0xff] %v3981_v29  ;;  %v915_v51 = vxor.u32 2147483648, %v914_v45  ;;  %v1162_v21 = vshll.u32 %v1158_v27, 16  ;;  %v1178_v24 = vmul.u32 %v1176_v22, %v1152_v59  ;;  %v1180_v52 = vmul.u32 %v1176_v22, %v1153_v41 }
 0x11c   : > { %v4599_v19 = vand.u32 2147483647, %v3422_v20  ;;  %vm2793_vm12 = vcmp.lt.s32.totalorder %v2792_v10, 0  ;;  %vm1164_vm13 = vc.u32 %v1156_v54, %v1160_v3  ;;  %v1166_v18 = vadd.s32 %v1160_v3, %v1156_v54 }
 0x11d   : > { %v1182_v53 = vshll.u32 %v1179_v1, 16  ;;  %v1042_v35 = vadd.s32 %v3863_v34, %v3861_v5  ;;  %v1057_v58 = vsel %vm2793_vm12, 0, %v2792_v10  ;;  %v1165_v43 = vsel %vm1164_vm13, 1, %v4589_v33 }
 0x11e   : > { %vm3990_vm11 = vcmp.le.f32.partialorder %v4599_v19, 0.7853982  ;;  %v1261_v25 = vand.u32 2139095040, %v3691_v39  ;;  %v1062_v59 = vsub.s32 4294967266, %v1057_v58  ;;  %v1119_v22 = vshrl.u32 %v4592_v28, %v3867_v14 }
 0x11f   : > { %v1167_v19 = vadd.s32 %v1165_v43, %v1159_v0  ;;  %v1181_v61 = vmul.u32 %v1177_v36, %v1153_v41  ;;  %v1140_v38 = vsel %vm1138_vm4, %v3902_v16, 2102212464  ;;  %v1161_v54 = vshrl.u32 %v1157_v48, 16 }
 0x120   : > { %vm1168_vm14 = vc.u32 %v1166_v18, %v1162_v21  ;;  %v1184_v3 = vshll.u32 %v1180_v52, 16  ;;  %vm633_vm15 = vcmp.eq.s32.totalorder %v3970_v23, 2  ;;  %v1058_v5 = vsub.s32 32, %v1057_v58 }
 0x121   : > { %v1063_v34 = vadd.s32 127, %v1062_v59  ;;  %v1169_v10 = vsel %vm1168_vm14, 1, %v4589_v33  ;;  %vm1186_vm0 = vc.u32 %v1178_v24, %v1182_v53  ;;  %v1188_v14 = vadd.s32 %v1182_v53, %v1178_v24 }
 0x122   : > { %v1171_v4 = vadd.s32 %v1169_v10, %v1167_v19  ;;  %v1187_v8 = vsel %vm1186_vm0, 1, %v4589_v33  ;;  %v1262_v0 = vshrl.u32 %v1261_v25, 23  ;;  %v916_v36 = vsel %vm795_vm10, %v915_v51, %v914_v45 }
 0x123   : > { %v1139_v16 = vsel %vm1135_vm3, %v1119_v22, %v3897_v56  ;;  %v1163_v41 = vshrl.u32 %v1158_v27, 16  ;;  %v1189_v48 = vadd.s32 %v1187_v8, %v1181_v61  ;;  %v1183_v18 = vshrl.u32 %v1179_v1, 16 }
 0x124   : > { %v1172_v21 = vadd.s32 %v1171_v4, %v1161_v54  ;;  %vm1190_vm1 = vc.u32 %v1188_v14, %v1184_v3  ;;  %v2797_v43 = vadd.s32 4294967169, %v1262_v0  ;;  %v1059_v59 = vshll.u32 %v3961_v2, %v1057_v58 }
 0x125   : > { %v1141_v24 = vsel %vm1137_vm7, %v3899_v63, %v1140_v38  ;;  %v1185_v53 = vshrl.u32 %v1180_v52, 16  ;;  %v1191_v25 = vsel %vm1190_vm1, 1, %v4589_v33  ;;  %v1060_v45 = vshrl.u32 %v1042_v35, %v1058_v5 }
 0x126   : > { %v1064_v51 = vshll.u32 %v1063_v34, 23  ;;  %v1193_v19 = vadd.s32 %v1191_v25, %v1189_v48  ;;  %v1268_v10 = vadd.s32 1, %v2797_v43  ;;  %v4552_v56 = vxor.u32 2147483648, %v3976_v62 }
 0x127   : > { %v768_v61 = vadd.f32 0.041655596, %v767_v44  ;;  %v4017_v4 = vadd.s32 %v1172_v21, %v1163_v41  ;;  %v4019_v8 = vadd.s32 %v1188_v14, %v1184_v3  ;;  %v4024_v2 = vsel %vm3990_vm11, %v3422_v20, %v916_v36 }
 0x128   : > { %v1142_v63 = vsel %vm1136_vm8, %v1139_v16, %v1141_v24  ;;  %v1194_v38 = vadd.s32 %v1193_v19, %v1183_v18  ;;  %vm1269_vm2 = vcmp.gt.s32.totalorder %v1268_v10, 0  ;;  %v4030_v1 = vsel %vm3907_vm5, 0, %v763_v46 }
 0x129   : > { %4602 = vst [vmem:[#allocation20_spill] sm:$0xff] %v4030_v1  ;;  %v775_v27 = vadd.f32 0.008332121, %v774_v47  ;;  %v4554_v44 = vand.u32 2147483647, %v3691_v39  ;;  %v1270_v52 = vsel %vm1269_vm2, %v1268_v10, 0  ;;  %v1061_v35 = vor.u32 %v1060_v45, %v1059_v59 }
 0x12a   : > { %v1065_v58 = vor.u32 4788187, %v1064_v51  ;;  %v1195_v22 = vadd.s32 %v1194_v38, %v1185_v53  ;;  %v1272_v54 = vand.u32 31, %v1270_v52  ;;  %v4553_v3 = vxor.u32 2147483648, %v3981_v29 }
 0x12b   : > { %v4036_v11 = vmul.f32 %v4024_v2, %v4024_v2  ;;  %v1196_v5 = vmul.u32 %v3931_v57, %v1142_v63  ;;  %vm1198_vm3 = vc.u32 %v4017_v4, %v4019_v8  ;;  %v4046_v60 = vsel %vm633_vm15, %v4552_v56, %v3981_v29 }
 0x12c   : > { %v4049_v46 = vadd.s32 3, %v4030_v1  ;;  %v1199_v47 = vadd.s32 1, %v1195_v22  ;;  %v4051_v34 = vsub.s32 32, %v1272_v54  ;;  %v769_v14 = vmul.f32 %v768_v61, %v3974_v30 }
 0x12d   : > { %v776_v57 = vmul.f32 %v775_v27, %v3974_v30  ;;  %v917_v0 = vsub.s32 4, %v3723_v31  ;;  %v922_v36 = vmul.f32 -0.001358992, %v4036_v11  ;;  %v1066_v16 = vand.u32 2147483647, %v1065_v58 }
 0x12e   : > { %v1068_v41 = vcvt.s32.f32 %v1061_v35  ;;  %v1200_v48 = vsel %vm1198_vm3, %v1199_v47, %v1195_v22  ;;  %v1265_v21 = vand.u32 8388607, %v4554_v44  ;;  %vm950_vm4 = vcmp.lt.s32.totalorder %v3608_v50, 0 }
 0x12f   : > { %v1201_v18 = vadd.s32 %v1200_v48, %v1196_v5  ;;  %v1278_v43 = vshll.u32 %v4582_v42, %v1272_v54  ;;  %v1281_v59 = vshll.u32 %v4584_v7, %v1272_v54  ;;  %v1284_v24 = vshll.u32 %v4583_v55, %v1272_v54 }
 0x130   : > { %v1279_v53 = vshrl.u32 %v4584_v7, %v4051_v34  ;;  %v1282_v25 = vshrl.u32 %v4583_v55, %v4051_v34  ;;  %v1285_v45 = vshrl.u32 %v4585_v6, %v4051_v34  ;;  %v1287_v51 = vshll.u32 %v4585_v6, %v1272_v54 }
 0x131   : > { %vm630_vm5 = vcmp.eq.s32.totalorder %v3970_v23, 0  ;;  %v770_v19 = vadd.f32 -0.4999988, %v769_v14  ;;  %v929_v10 = vmul.f32 -0.00019511016, %v4036_v11  ;;  %v1202_v61 = vadd.s32 536870912, %v1201_v18 }
 0x132   : > { %v4072_v63 = vshrl.u32 %v1270_v52, 5  ;;  %v777_v38 = vadd.f32 -0.16666654, %v776_v57  ;;  %v4603_v27 = vand.u32 2147483647, %v3608_v50  ;;  %v1069_v55 = vmul.f32 %v1068_v41, %v1066_v16 }
 0x133   : > { %v1266_v35 = vor.u32 8388608, %v1265_v21  ;;  %v1288_v6 = vshrl.u32 %v4586_v32, %v4051_v34  ;;  %v923_v58 = vadd.f32 0.041655596, %v922_v36  ;;  %v4082_v22 = vshrl.u32 %v1202_v61, 30 }
 0x134   : > { %vm4076_vm6 = vcmp.le.f32.partialorder %v4603_v27, 0.7853982  ;;  %v1275_v5 = vshll.u32 %v4592_v28, %v1272_v54  ;;  %v1276_v52 = vshrl.u32 %v4582_v42, %v4051_v34  ;;  %v4087_v47 = vor.u32 %v1279_v53, %v1278_v43 }
 0x135   : > { %v4089_v14 = vor.u32 %v1282_v25, %v1281_v59  ;;  %v1286_v57 = vor.u32 %v1285_v45, %v1284_v24  ;;  %v1289_v48 = vor.u32 %v1288_v6, %v1287_v51  ;;  %v930_v27 = vadd.f32 0.008332121, %v929_v10 }
 0x136   : > { %v1204_v16 = vshll.u32 %v4082_v22, 30  ;;  %vm1290_vm7 = vcmp.lt.s32.totalorder %v4072_v63, 1  ;;  %vm1293_vm8 = vcmp.lt.s32.totalorder %v4072_v63, 4  ;;  %v771_v32 = vmul.f32 %v770_v19, %v3974_v30 }
 0x137   : > { %v918_v54 = vsel %vm795_vm10, %v917_v0, %v3723_v31  ;;  %v1070_v42 = vxor.u32 2147483648, %v1069_v55  ;;  %v4098_v36 = vshll.u32 %v1266_v35, 8  ;;  %v778_v41 = vmul.f32 %v777_v38, %v3974_v30 }
 0x138   : > { %v1205_v21 = vsub.s32 %v1201_v18, %v1204_v16  ;;  %v4101_v43 = vor.u32 %v1276_v52, %v1275_v5  ;;  %vm1292_vm9 = vcmp.lt.s32.totalorder %v4072_v63, 3  ;;  %vm1291_vm12 = vcmp.lt.s32.totalorder %v4072_v63, 2 }
 0x139   : > { %v1299_v59 = vsel %vm1293_vm8, %v1286_v57, 920167782  ;;  %v1302_v31 = vsel %vm1290_vm7, %v4087_v47, %v4089_v14  ;;  %v1303_v0 = vsel %vm1293_vm8, %v1289_v48, 1326507024  ;;  %v924_v30 = vmul.f32 %v923_v58, %v4036_v11 }
 0x13a   : > { %v931_v18 = vmul.f32 %v930_v27, %v4036_v11  ;;  %vm1206_vm10 = vcmp.lt.s32.totalorder %v1205_v21, 0  ;;  %v1207_v24 = vsub.s32 0, %v1205_v21  ;;  %v1071_v53 = vsel %vm950_vm4, %v1070_v42, %v1069_v55 }
 0x13b   : > { %v1304_v25 = vsel %vm1292_vm9, %v1286_v57, %v1303_v0  ;;  %v1307_v45 = vand.u32 65535, %v4098_v36  ;;  %v1308_v51 = vshrl.u32 %v4098_v36, 16  ;;  %v1298_v10 = vsel %vm1290_vm7, %v4101_v43, %v4087_v47 }
 0x13c   : > { %v1208_v19 = vsel %vm1206_vm10, %v1207_v24, %v1205_v21  ;;  %v1300_v61 = vsel %vm1292_vm9, %v4089_v14, %v1299_v59  ;;  %v1305_v38 = vsel %vm1291_vm12, %v1302_v31, %v1304_v25  ;;  %v4135_v55 = vsel %vm630_vm5, %v3976_v62, %v4553_v3 }
 0x13d   : > { %v1209_v35 = vclz %v1208_v19  ;;  %v1309_v6 = vand.u32 65535, %v1305_v38  ;;  %v1310_v58 = vshrl.u32 %v1305_v38, 16  ;;  %v4138_v5 = vand.u32 3, %v4049_v46 }
 0x13e   : > { %v4142_v52 = vsel %vm3990_vm11, 0, %v918_v54  ;;  %v932_v57 = vadd.f32 -0.16666654, %v931_v18  ;;  %v4147_v48 = vsel %vm4076_vm6, %v3608_v50, %v1071_v53  ;;  %v4149_v27 = vadd.f32 1.0, %v771_v32 }
 0x13f   : > { %v2795_v16 = vadd.s32 4294967294, %v1209_v35  ;;  %v1301_v42 = vsel %vm1291_vm12, %v1298_v10, %v1300_v61  ;;  %v1312_v59 = vmul.u32 %v1310_v58, %v1307_v45  ;;  %v4153_v31 = vadd.f32 1.0, %v778_v41 }
 0x140   : > { %v4155_v46 = vadd.f32 -0.4999988, %v924_v30  ;;  %v1197_v17 = vadd.s32 %v4019_v8, %v4017_v4  ;;  %v4159_v54 = vmul.u32 %v1309_v6, %v1308_v51  ;;  %v4163_v0 = vmul.f32 %v4147_v48, %v4147_v48 }
 0x141   : > { %vm2796_vm11 = vcmp.lt.s32.totalorder %v2795_v16, 0  ;;  %v1311_v32 = vmul.u32 %v1309_v6, %v1307_v45  ;;  %v1315_v18 = vshll.u32 %v1312_v59, 16  ;;  %v4166_v24 = vmul.f32 %v932_v57, %v4036_v11 }
 0x142   : > { %v1212_v53 = vsel %vm2796_vm11, 0, %v2795_v16  ;;  %v1331_v41 = vand.u32 65535, %v1301_v42  ;;  %v1332_v25 = vshrl.u32 %v1301_v42, 16  ;;  %v1314_v61 = vmul.u32 %v1310_v58, %v1308_v51 }
 0x143   : > { %v1213_v30 = vsub.s32 32, %v1212_v53  ;;  %v1214_v19 = vshll.u32 %v1205_v21, %v1212_v53  ;;  %v1217_v10 = vsub.s32 4294967266, %v1212_v53  ;;  %v1072_v4 = vsub.s32 4, %v3916_v40 }
 0x144   : > { %v1077_v8 = vmul.f32 -0.001358992, %v4163_v0  ;;  %v1274_v38 = vshrl.u32 %v4592_v28, %v4051_v34  ;;  %v1317_v35 = vshll.u32 %v4159_v54, 16  ;;  %v1084_v6 = vmul.f32 -0.00019511016, %v4163_v0 }
 0x145   : > { %v1215_v57 = vshrl.u32 %v1197_v17, %v1213_v30  ;;  %v1218_v56 = vadd.s32 127, %v1217_v10  ;;  %vm1319_vm13 = vc.u32 %v1311_v32, %v1315_v18  ;;  %vm1105_vm14 = vcmp.lt.s32.totalorder %v3686_v15, 0 }
 0x146   : > { %v1320_v21 = vsel %vm1319_vm13, 1, %v4589_v33  ;;  %v1321_v16 = vadd.s32 %v1315_v18, %v1311_v32  ;;  %v1333_v58 = vmul.u32 %v1331_v41, %v1307_v45  ;;  %v1334_v42 = vmul.u32 %v1332_v25, %v1307_v45 }
 0x147   : > { %v1216_v53 = vor.u32 %v1215_v57, %v1214_v19  ;;  %v1219_v3 = vshll.u32 %v1218_v56, 23  ;;  %v1322_v44 = vadd.s32 %v1320_v21, %v1314_v61  ;;  %v1335_v62 = vmul.u32 %v1331_v41, %v1308_v51 }
 0x148   : > { %v1316_v29 = vshrl.u32 %v1312_v59, 16  ;;  %vm1323_vm15 = vc.u32 %v1321_v16, %v1317_v35  ;;  %v1336_v28 = vmul.u32 %v1332_v25, %v1308_v51  ;;  %v1337_v34 = vshll.u32 %v1334_v42, 16 }
 0x149   : > { %v1220_v1 = vor.u32 4788187, %v1219_v3  ;;  %v1223_v39 = vcvt.s32.f32 %v1216_v53  ;;  %v1324_v17 = vsel %vm1323_vm15, 1, %v4589_v33  ;;  %v1339_v30 = vshll.u32 %v1335_v62, 16 }
 0x14a   : > { %v1295_v10 = vsel %vm1293_vm8, %v4089_v14, 2102212464  ;;  %v1326_v32 = vadd.s32 %v1324_v17, %v1322_v44  ;;  %vm1341_vm0 = vc.u32 %v1333_v58, %v1337_v34  ;;  %v1343_v45 = vadd.s32 %v1337_v34, %v1333_v58 }
 0x14b   : > { %v1085_v18 = vadd.f32 0.008332121, %v1084_v6  ;;  %v1221_v56 = vand.u32 2147483647, %v1220_v1  ;;  %v1318_v41 = vshrl.u32 %v4159_v54, 16  ;;  %v1342_v59 = vsel %vm1341_vm0, 1, %v4589_v33 }
 0x14c   : > { %v1327_v51 = vadd.s32 %v1326_v32, %v1316_v29  ;;  %v1338_v25 = vshrl.u32 %v1334_v42, 16  ;;  %v1344_v3 = vadd.s32 %v1342_v59, %v1336_v28  ;;  %vm1345_vm1 = vc.u32 %v1343_v45, %v1339_v30 }
 0x14d   : > { %vm785_vm2 = vcmp.eq.s32.totalorder %v4138_v5, 0  ;;  %vm788_vm3 = vcmp.eq.s32.totalorder %v4138_v5, 2  ;;  %v1224_v19 = vmul.f32 %v1223_v39, %v1221_v56  ;;  %v1294_v44 = vsel %vm1290_vm7, %v1274_v38, %v4101_v43 }
 0x14e   : > { %v1296_v1 = vsel %vm1292_vm9, %v4087_v47, %v1295_v10  ;;  %v1346_v14 = vsel %vm1345_vm1, 1, %v4589_v33  ;;  %v1078_v54 = vadd.f32 0.041655596, %v1077_v8  ;;  %v4606_v29 = vand.u32 2147483647, %v3686_v15 }
 0x14f   : > { %v1340_v35 = vshrl.u32 %v1335_v62, 16  ;;  %v1348_v6 = vadd.s32 %v1346_v14, %v1344_v3  ;;  %v1086_v39 = vmul.f32 %v1085_v18, %v4163_v0  ;;  %v1225_v57 = vxor.u32 2147483648, %v1224_v19 }
 0x150   : > { %vm4193_vm5 = vcmp.le.f32.partialorder %v4606_v29, 0.7853982  ;;  %v4198_v21 = vadd.s32 %v1327_v51, %v1318_v41  ;;  %v4200_v43 = vadd.s32 %v1343_v45, %v1339_v30  ;;  %v4204_v47 = vmul.f32 %v4153_v31, %v3959_v9 }
 0x151   : > { %v937_v33 = vadd.s32 3, %v4142_v52  ;;  %v1297_v8 = vsel %vm1291_vm12, %v1294_v44, %v1296_v1  ;;  %v1349_v38 = vadd.s32 %v1348_v6, %v1338_v25  ;;  %vm629_vm7 = vcmp.lt.s32.totalorder %v3970_v23, 2 }
 0x152   : > { %vm784_vm8 = vcmp.lt.s32.totalorder %v4138_v5, 2  ;;  %v926_v62 = vmul.f32 %v4155_v46, %v4036_v11  ;;  %v934_v16 = vadd.f32 1.0, %v4166_v24  ;;  %v1073_v9 = vsel %vm950_vm4, %v1072_v4, %v3916_v40 }
 0x153   : > { %v1226_v31 = vsel %vm1105_vm14, %v1225_v57, %v1224_v19  ;;  %v1079_v63 = vmul.f32 %v1078_v54, %v4163_v0  ;;  %v1227_v58 = vsub.s32 4, %v4082_v22  ;;  %v1350_v53 = vadd.s32 %v1349_v38, %v1340_v35 }
 0x154   : > { %v1229_v42 = vsel %vm4193_vm5, %v3686_v15, %v1226_v31  ;;  %v1087_v28 = vadd.f32 -0.16666654, %v1086_v39  ;;  %v1351_v46 = vmul.u32 %v4098_v36, %v1297_v8  ;;  %vm1353_vm9 = vc.u32 %v4198_v21, %v4200_v43 }
 0x155   : > { %v1231_v11 = vmul.f32 %v1229_v42, %v1229_v42  ;;  %v786_v40 = vxor.u32 2147483648, %v4204_v47  ;;  %v789_v24 = vxor.u32 2147483648, %v4149_v27  ;;  %v938_v4 = vand.u32 3, %v937_v33 }
 0x156   : > { %v1354_v34 = vadd.s32 1, %v1350_v53  ;;  %vm316_vm4 = vweird.f32 %v3121_v12  ;;  %vm471_vm12 = vweird.f32 %v3124_v13  ;;  %v4231_v17 = vadd.f32 1.0, %v926_v62 }
 0x157   : > { %v4234_v30 = vmul.f32 %v934_v16, %v4024_v2  ;;  %v1232_v10 = vmul.f32 -0.001358992, %v1231_v11  ;;  %v1239_v36 = vmul.f32 -0.00019511016, %v1231_v11  ;;  %v4238_v32 = vsel %vm4076_vm6, 0, %v1073_v9 }
 0x158   : > { %v1080_v45 = vadd.f32 -0.4999988, %v1079_v63  ;;  %v1228_v18 = vsel %vm1105_vm14, %v1227_v58, %v4082_v22  ;;  %v1355_v56 = vsel %vm1353_vm9, %v1354_v34, %v1350_v53  ;;  %v1088_v41 = vmul.f32 %v1087_v28, %v4163_v0  ;;  %v4609_v58 = vld [vmem:[#allocation17_spill] sm:$0xff] }
 0x159   : > { %v1233_v59 = vadd.f32 0.041655596, %v1232_v10  ;;  %v1240_v51 = vadd.f32 0.008332121, %v1239_v36  ;;  %v1356_v25 = vadd.s32 %v1355_v56, %v1351_v46  ;;  %v787_v2 = vsel %vm785_vm2, %v4149_v27, %v786_v40 }
 0x15a   : > { %v790_v7 = vsel %vm788_vm3, %v789_v24, %v4204_v47  ;;  %vm940_vm6 = vcmp.eq.s32.totalorder %v938_v4, 0  ;;  %vm943_vm10 = vcmp.eq.s32.totalorder %v938_v4, 2  ;;  %v944_v22 = vxor.u32 2147483648, %v4231_v17 }
 0x15b   : > { %v1234_v3 = vmul.f32 %v1233_v59, %v1231_v11  ;;  %v1241_v19 = vmul.f32 %v1240_v51, %v1231_v11  ;;  %v1357_v44 = vadd.s32 536870912, %v1356_v25  ;;  %v941_v1 = vxor.u32 2147483648, %v4234_v30 }
 0x15c   : > { %v1081_v14 = vmul.f32 %v1080_v45, %v4163_v0  ;;  %v1092_v54 = vadd.s32 3, %v4238_v32  ;;  %v4260_v29 = vsel %vm4193_vm5, 0, %v1228_v18  ;;  %v1089_v35 = vadd.f32 1.0, %v1088_v41 }
 0x15d   : > { %v1235_v6 = vadd.f32 -0.4999988, %v1234_v3  ;;  %v1242_v39 = vadd.f32 -0.16666654, %v1241_v19  ;;  %v1358_v57 = vshrl.u32 %v1357_v44, 30  ;;  %vm626_vm11 = vweird.f32 %v3133_v26 }
 0x15e   : > { %v636_v33 = vsel %vm629_vm7, %v4135_v55, %v4046_v60  ;;  %vm781_vm13 = vweird.f32 %v3375_v37  ;;  %v791_v0 = vsel %vm784_vm8, %v787_v2, %v790_v7  ;;  %v1247_v38 = vadd.s32 3, %v4260_v29 }
 0x15f   : > { %v1236_v8 = vmul.f32 %v1235_v6, %v1231_v11  ;;  %v1243_v61 = vmul.f32 %v1242_v39, %v1231_v11  ;;  %v1359_v62 = vshll.u32 %v1358_v57, 30  ;;  %vm939_vm14 = vcmp.lt.s32.totalorder %v938_v4, 2  ;;  %v4610_v4 = vld [vmem:[#allocation13_spill] sm:$0xff] }
 0x160   : > { %v942_v16 = vsel %vm940_vm6, %v4231_v17, %v941_v1  ;;  %v945_v23 = vsel %vm943_vm10, %v944_v22, %v4234_v30  ;;  %v1093_v60 = vand.u32 3, %v1092_v54  ;;  %v4279_v55 = vadd.f32 1.0, %v1081_v14  ;;  %v4614_v39 = vld [vmem:[#allocation9_spill] sm:$0xff] }
 0x161   : > { %v4282_v5 = vmul.f32 %v1089_v35, %v4147_v48  ;;  %v1244_v9 = vadd.f32 1.0, %v1243_v61  ;;  %v1360_v31 = vsub.s32 %v1356_v25, %v1359_v62  ;;  %v4287_v63 = vsel %vm316_vm4, nan, %v3937_v49 }
 0x162   : > { %v4292_v53 = vsel %vm471_vm12, nan, %v4609_v58  ;;  %v4296_v28 = vsel %vm626_vm11, nan, %v636_v33  ;;  %v4298_v11 = vadd.f32 1.0, %v1236_v8  ;;  %v1248_v46 = vand.u32 3, %v1247_v38 }
 0x163   : > { %v4300_v48 = vmul.f32 %v1244_v9, %v1229_v42  ;;  %vm1361_vm15 = vcmp.lt.s32.totalorder %v1360_v31, 0  ;;  %v1362_v34 = vsub.s32 0, %v1360_v31  ;;  %v4304_v49 = vsel %vm781_vm13, nan, %v791_v0  ;;  %v4615_v0 = vld [vmem:[#allocation10_spill] sm:$0xff] }
 0x164   : > { %vm936_vm0 = vweird.f32 %v3422_v20  ;;  %v946_v10 = vsel %vm939_vm14, %v942_v16, %v945_v23  ;;  %vm1095_vm1 = vcmp.eq.s32.totalorder %v1093_v60, 0  ;;  %v1096_v36 = vxor.u32 2147483648, %v4282_v5  ;;  %v4616_v23 = vld [vmem:[#allocation16_spill] sm:$0xff] }
 0x165   : > { %vm1098_vm2 = vcmp.eq.s32.totalorder %v1093_v60, 2  ;;  %v1099_v45 = vxor.u32 2147483648, %v4279_v55  ;;  %v1363_v18 = vsel %vm1361_vm15, %v1362_v34, %v1360_v31  ;;  %v1251_v42 = vxor.u32 2147483648, %v4300_v48 }
 0x166   : > { %v1254_v56 = vxor.u32 2147483648, %v4298_v11  ;;  %v1364_v41 = vclz %v1363_v18  ;;  %v1382_v59 = vsub.s32 4, %v1358_v57  ;;  %v4314_v51 = vsel %vm936_vm0, nan, %v946_v10  ;;  %v4619_v10 = vld [vmem:[#allocation11_spill] sm:$0xff] }
 0x167   : > { %vm4563_vm3 = vweird.f32 %v3608_v50  ;;  %vm1250_vm5 = vcmp.eq.s32.totalorder %v1248_v46, 0  ;;  %vm1253_vm7 = vcmp.eq.s32.totalorder %v1248_v46, 2  ;;  %vm1094_vm8 = vcmp.lt.s32.totalorder %v1093_v60, 2 }
 0x168   : > { %v4611_v25 = vand.u32 2147483647, %v4610_v4  ;;  %vm1260_vm6 = vcmp.lt.s32.totalorder %v4610_v4, 0  ;;  %v2798_v7 = vadd.s32 4294967294, %v1364_v41  ;;  %v1097_v3 = vsel %vm1095_vm1, %v4279_v55, %v1096_v36 }
 0x169   : > { %v1100_v19 = vsel %vm1098_vm2, %v1099_v45, %v4282_v5  ;;  %vm1249_vm10 = vcmp.lt.s32.totalorder %v1248_v46, 2  ;;  %v1352_v44 = vadd.s32 %v4200_v43, %v4198_v21  ;;  %v1252_v14 = vsel %vm1250_vm5, %v4298_v11, %v1251_v42  ;;  %v4617_v46 = vld [vmem:[#allocation12_spill] sm:$0xff] }
 0x16a   : > { %vm4319_vm9 = vcmp.le.f32.partialorder %v4611_v25, 0.7853982  ;;  %v1255_v54 = vsel %vm1253_vm7, %v1254_v56, %v4300_v48  ;;  %vm2799_vm14 = vcmp.lt.s32.totalorder %v2798_v7, 0  ;;  %v1383_v35 = vsel %vm1260_vm6, %v1382_v59, %v1358_v57 }
 0x16b   : > { %vm4562_vm15 = vweird.f32 %v3686_v15  ;;  %v1367_v6 = vsel %vm2799_vm14, 0, %v2798_v7  ;;  %v1557_v33 = vand.u32 3, %v4614_v39  ;;  %v1711_v8 = vand.u32 3, %v4615_v0  ;;  %v4625_v39 = vld [vmem:[#allocation15_spill] sm:$0xff]  ;;  %v4627_v0 = vld [vmem:[#allocation14_spill] sm:$0xff] }
 0x16c   : > { %v1101_v21 = vsel %vm1094_vm8, %v1097_v3, %v1100_v19  ;;  %v1368_v43 = vsub.s32 32, %v1367_v6  ;;  %v1369_v61 = vshll.u32 %v1360_v31, %v1367_v6  ;;  %v1372_v38 = vsub.s32 4294967266, %v1367_v6 }
 0x16d   : > { %v1256_v62 = vsel %vm1249_vm10, %v1252_v14, %v1255_v54  ;;  %v4348_v16 = vsel %vm4319_vm9, 0, %v1383_v35  ;;  %vm1559_vm1 = vcmp.eq.s32.totalorder %v1557_v33, 0  ;;  %v1865_v57 = vand.u32 3, %v4616_v23 }
 0x16e   : > { %v1370_v9 = vshrl.u32 %v1352_v44, %v1368_v43  ;;  %v1373_v58 = vadd.s32 127, %v1372_v38  ;;  %vm1558_vm2 = vcmp.lt.s32.totalorder %v1557_v33, 2  ;;  %v4618_v34 = vxor.u32 2147483648, %v4617_v46  ;;  %v4621_v44 = vld [vmem:[#allocation8_spill] sm:$0xff] }
 0x16f   : > { %v4356_v60 = vsel %vm4563_vm3, nan, %v1101_v21  ;;  %vm1562_vm5 = vcmp.eq.s32.totalorder %v1557_v33, 2  ;;  %vm1713_vm7 = vcmp.eq.s32.totalorder %v1711_v8, 0  ;;  %vm1716_vm8 = vcmp.eq.s32.totalorder %v1711_v8, 2 }
 0x170   : > { %v1561_v18 = vsel %vm1559_vm1, %v4619_v10, %v4618_v34  ;;  %v4360_v31 = vsel %vm4562_vm15, nan, %v1256_v62  ;;  %v1371_v41 = vor.u32 %v1370_v9, %v1369_v61  ;;  %v1374_v59 = vshll.u32 %v1373_v58, 23  ;;  %v4629_v62 = vld [vmem:[#allocation20_spill] sm:$0xff]  ;;  %v4630_v58 = vld [vmem:[#allocation19_spill] sm:$0xff]  ;;  %v4632_v34 = vld [vmem:[#allocation18_spill] sm:$0xff] }
 0x171   : > { %v4620_v25 = vxor.u32 2147483648, %v4619_v10  ;;  %v4366_v3 = vadd.s32 3, %v4348_v16  ;;  %vm1712_vm10 = vcmp.lt.s32.totalorder %v1711_v8, 2  ;;  %vm1867_vm14 = vcmp.eq.s32.totalorder %v1865_v57, 0 }
 0x172   : > { %v4622_v14 = vand.u32 1, %v4621_v44  ;;  %v1375_v35 = vor.u32 4788187, %v1374_v59  ;;  %v1378_v6 = vcvt.s32.f32 %v1371_v41  ;;  %v4626_v33 = vxor.u32 2147483648, %v4625_v39 }
 0x173   : > { %v1564_v7 = vsel %vm1562_vm5, %v4620_v25, %v4617_v46  ;;  %v4628_v43 = vxor.u32 2147483648, %v4627_v0  ;;  %vm1870_vm5 = vcmp.eq.s32.totalorder %v1865_v57, 2  ;;  %v2019_v23 = vand.u32 3, %v4629_v62 }
 0x174   : > { %v1565_v19 = vsel %vm1558_vm2, %v1561_v18, %v1564_v7  ;;  %vm4370_vm1 = vcmp.eq.s32.totalorder %v4622_v14, 0  ;;  %v1715_v21 = vsel %vm1713_vm7, %v4627_v0, %v4626_v33  ;;  %vm1866_vm2 = vcmp.lt.s32.totalorder %v1865_v57, 2  ;;  %v2655_v33 = vld [vmem:[%s3101_s24 + $0x8] sm:$0xf]  ;;  %v2656_v0 = vld [vmem:[%s3101_s24 + $0xc] sm:$0xf] }
 0x175   : > { %v1718_v61 = vsel %vm1716_vm8, %v4628_v43, %v4625_v39  ;;  %v4382_v38 = vsel %vm316_vm4, nan, %v1565_v19  ;;  %v1376_v9 = vand.u32 2147483647, %v1375_v35  ;;  %v4631_v46 = vxor.u32 2147483648, %v4630_v58 }
 0x176   : > { %v4633_v18 = vxor.u32 2147483648, %v4632_v34  ;;  %v2173_v59 = vand.u32 3, %v4142_v52  ;;  %vm2020_vm7 = vcmp.lt.s32.totalorder %v2019_v23, 2  ;;  %vm2021_vm8 = vcmp.eq.s32.totalorder %v2019_v23, 0 }
 0x177   : > { %v1869_v10 = vsel %vm1867_vm14, %v4632_v34, %v4631_v46  ;;  %vm2024_vm15 = vcmp.eq.s32.totalorder %v2019_v23, 2  ;;  %v2327_v12 = vand.u32 3, %v4238_v32  ;;  %v1379_v25 = vmul.f32 %v1378_v6, %v1376_v9  ;;  %v2659_v23 = vld [vmem:[%s3101_s24 + $0x18] sm:$0xf] }
 0x178   : > { %v1872_v41 = vsel %vm1870_vm5, %v4633_v18, %v4630_v58  ;;  %v1719_v57 = vsel %vm1712_vm10, %v1715_v21, %v1718_v61  ;;  %v2023_v7 = vsel %vm2021_vm8, %v4149_v27, %v786_v40  ;;  %v2026_v19 = vsel %vm2024_vm15, %v789_v24, %v4204_v47  ;;  %v2657_v21 = vld [vmem:[%s3101_s24 + $0x10] sm:$0xf]  ;;  %v2658_v61 = vld [vmem:[%s3101_s24 + $0x14] sm:$0xf] }
 0x179   : > { %v1873_v44 = vsel %vm1866_vm2, %v1869_v10, %v1872_v41  ;;  %vm2174_vm4 = vcmp.lt.s32.totalorder %v2173_v59, 2  ;;  %vm2175_vm14 = vcmp.eq.s32.totalorder %v2173_v59, 0  ;;  %vm2178_vm5 = vcmp.eq.s32.totalorder %v2173_v59, 2 }
 0x17a   : > { %v1380_v52 = vxor.u32 2147483648, %v1379_v25  ;;  %v2027_v14 = vsel %vm2020_vm7, %v2023_v7, %v2026_v19  ;;  %v2177_v32 = vsel %vm2175_vm14, %v4231_v17, %v941_v1  ;;  %v2180_v8 = vsel %vm2178_vm5, %v944_v22, %v4234_v30 }
 0x17b   : > { %v2181_v35 = vsel %vm2174_vm4, %v2177_v32, %v2180_v8  ;;  %vm2328_vm10 = vcmp.lt.s32.totalorder %v2327_v12, 2  ;;  %vm2329_vm8 = vcmp.eq.s32.totalorder %v2327_v12, 0  ;;  %vm2332_vm3 = vcmp.eq.s32.totalorder %v2327_v12, 2  ;;  %v2660_v8 = vld [vmem:[%s3101_s24 + $0x1c] sm:$0xf] }
 0x17c   : > { %v1381_v27 = vsel %vm1260_vm6, %v1380_v52, %v1379_v25  ;;  %v1720_v47 = vsel %vm471_vm12, nan, %v1719_v57  ;;  %v2331_v40 = vsel %vm2329_vm8, %v4279_v55, %v1096_v36  ;;  %v2334_v24 = vsel %vm2332_vm3, %v1099_v45, %v4282_v5  ;;  %v2654_v45 = vld [vmem:[%s3101_s24 + $0x4] sm:$0xf] }
 0x17d   : > { %v1384_v17 = vsel %vm4319_vm9, %v4610_v4, %v1381_v27  ;;  %v1874_v30 = vsel %vm626_vm11, nan, %v1873_v44  ;;  %v2335_v22 = vsel %vm2328_vm10, %v2331_v40, %v2334_v24  ;;  %v2481_v13 = vand.u32 3, %v4260_v29  ;;  %v2653_v29 = vld [vmem:[%s3101_s24] sm:$0xf] }
 0x17e   : > { %v1386_v1 = vmul.f32 %v1384_v17, %v1384_v17  ;;  %v2028_v6 = vsel %vm781_vm13, nan, %v2027_v14  ;;  %v2182_v55 = vsel %vm936_vm0, nan, %v2181_v35  ;;  %vm4634_vm12 = vweird.f32 %v3608_v50 }
 0x17f   : > { %v2336_v5 = vsel %vm4634_vm12, nan, %v2335_v22  ;;  %vm2482_vm3 = vcmp.lt.s32.totalorder %v2481_v13, 2  ;;  %vm2483_vm9 = vcmp.eq.s32.totalorder %v2481_v13, 0  ;;  %vm2486_vm11 = vcmp.eq.s32.totalorder %v2481_v13, 2 }
 0x180   : > { %v2645_v26 = vsel %vm4370_vm1, %v4287_v63, %v4382_v38  ;;  %v1387_v37 = vmul.f32 -0.001358992, %v1386_v1  ;;  %v1394_v36 = vmul.f32 -0.00019511016, %v1386_v1  ;;  %v2485_v20 = vsel %vm2483_vm9, %v4298_v11, %v1251_v42 }
 0x181   : > { %v2488_v50 = vsel %vm2486_vm11, %v1254_v56, %v4300_v48  ;;  %v2646_v39 = vsel %vm4370_vm1, %v4292_v53, %v1720_v47  ;;  %v2647_v63 = vsel %vm4370_vm1, %v4296_v28, %v1874_v30  ;;  %vm4635_vm13 = vweird.f32 %v3686_v15 }
 0x182   : > { %v2489_v2 = vsel %vm2482_vm3, %v2485_v20, %v2488_v50  ;;  %v1388_v42 = vadd.f32 0.041655596, %v1387_v37  ;;  %v1395_v43 = vadd.f32 0.008332121, %v1394_v36  ;;  %v2648_v48 = vsel %vm4370_vm1, %v4304_v49, %v2028_v6 }
 0x183   : > { %v2490_v11 = vsel %vm4635_vm13, nan, %v2489_v2  ;;  %v2649_v53 = vsel %vm4370_vm1, %v4314_v51, %v2182_v55  ;;  %v2650_v28 = vsel %vm4370_vm1, %v4356_v60, %v2336_v5  ;;  %v2661_v38 = vadd.f32 %v2653_v29, %v2645_v26 }
 0x184   : > { %v2651_v56 = vsel %vm4370_vm1, %v4360_v31, %v2490_v11  ;;  %v1389_v15 = vmul.f32 %v1388_v42, %v1386_v1  ;;  %v1396_v62 = vmul.f32 %v1395_v43, %v1386_v1  ;;  %v2662_v9 = vadd.f32 %v2654_v45, %v2646_v39 }
 0x185   : > { %v2663_v58 = vadd.f32 %v2655_v33, %v2647_v63  ;;  %v2664_v49 = vadd.f32 %v2656_v0, %v2648_v48  ;;  %v2665_v46 = vadd.f32 %v2657_v21, %v2649_v53  ;;  %2669 = vst [vmem:[%s4467_s17] sm:$0xf] %v2661_v38  ;;  %v2666_v31 = vadd.f32 %v2658_v61, %v2650_v28 }
 0x186   : > { %v1390_v51 = vadd.f32 -0.4999988, %v1389_v15  ;;  %v1397_v60 = vadd.f32 -0.16666654, %v1396_v62  ;;  %2670 = vst [vmem:[%s4467_s17 + $0x4] sm:$0xf] %v2662_v9  ;;  %v2667_v18 = vadd.f32 %v2659_v23, %v2651_v56  ;;  %vm1401_vm14 = vweird.f32 %v4610_v4 }
 0x187   : > { %v1403_v34 = vand.u32 3, %v4366_v3  ;;  %v2635_v10 = vand.u32 3, %v4348_v16  ;;  %2671 = vst [vmem:[%s4467_s17 + $0x8] sm:$0xf] %v2663_v58 }
 0x188   : > { %v1391_v41 = vmul.f32 %v1390_v51, %v1386_v1  ;;  %v1398_v59 = vmul.f32 %v1397_v60, %v1386_v1  ;;  %2672 = vst [vmem:[%s4467_s17 + $0xc] sm:$0xf] %v2664_v49 }
 0x189   : > { %2673 = vst [vmem:[%s4467_s17 + $0x10] sm:$0xf] %v2665_v46  ;;  %vm1408_vm0 = vcmp.eq.s32.totalorder %v1403_v34, 2  ;;  %vm2640_vm6 = vcmp.eq.s32.totalorder %v2635_v10, 2  ;;  %vm1404_vm15 = vcmp.lt.s32.totalorder %v1403_v34, 2  ;;  %vm1405_vm2 = vcmp.eq.s32.totalorder %v1403_v34, 0 }
 0x18a   : > { %v1392_v12 = vadd.f32 1.0, %v1391_v41  ;;  %v1399_v25 = vadd.f32 1.0, %v1398_v59  ;;  %2674 = vst [vmem:[%s4467_s17 + $0x14] sm:$0xf] %v2666_v31  ;;  %vm2637_vm7 = vcmp.eq.s32.totalorder %v2635_v10, 0  ;;  %vm2636_vm4 = vcmp.lt.s32.totalorder %v2635_v10, 2 }
 0x18b   : > { %2675 = vst [vmem:[%s4467_s17 + $0x18] sm:$0xf] %v2667_v18 }
 0x18c   : > { %v1400_v57 = vmul.f32 %v1399_v25, %v1384_v17  ;;  %v1409_v7 = vxor.u32 2147483648, %v1392_v12 }
 0x18e   : > { %v1406_v16 = vxor.u32 2147483648, %v1400_v57  ;;  %v1410_v3 = vsel %vm1408_vm0, %v1409_v7, %v1400_v57  ;;  %v2642_v19 = vsel %vm2640_vm6, %v1409_v7, %v1400_v57 }
 0x190   : > { %v1407_v44 = vsel %vm1405_vm2, %v1392_v12, %v1406_v16  ;;  %v2639_v52 = vsel %vm2637_vm7, %v1392_v12, %v1406_v16 }
 0x191   : > { %v1411_v14 = vsel %vm1404_vm15, %v1407_v44, %v1410_v3  ;;  %v2643_v32 = vsel %vm2636_vm4, %v2639_v52, %v2642_v19 }
 0x192   : > { %v1412_v35 = vsel %vm1401_vm14, nan, %v1411_v14  ;;  %v2644_v27 = vsel %vm1401_vm14, nan, %v2643_v32 }
 0x193   : > { %v2652_v47 = vsel %vm4370_vm1, %v1412_v35, %v2644_v27 }
 0x194   : > { %v2668_v40 = vadd.f32 %v2660_v8, %v2652_v47 }
 0x196   : > { %2676 = vst [vmem:[%s4467_s17 + $0x1c] sm:$0xf] %v2668_v40 }
 0x197   : > { %2947 = shalt.err (!%p2944_p4)
}
 0x198   : > { %s2997_s20 = smov 64   ;;  %s2998_s21 = smov 4  }
 0x199   : > { %2833 = dma.vmem_to_hbm [thread:$0]  (%p3059_p11), %s2691_s10, 512, %s2693_s30, %s2678_s2, %s2997_s20, %s2997_s20, %s2998_s21  }
 0x19a PF: > { %s2707_s22 = sand.u32 1, %s2974_s6   ;;  %p4636_p7 = scmp.ge.s32.totalorder %s2986_s9, 2 }
 0x19b   : > { %s2708_s23 = scalar_lea.sflag [#allocation4], %s2707_s22 }
 0x19c   : > { %p2840_p5 = pnand %p4636_p7, %p3063_p12 }
 0x19e   : > { %p2841_p8 = pneg %p2840_p5 }
 0x1a0   : > { %2969 = dma.done.wait (%p2841_p8), %s2708_s23, 512  }
 0x1a1   : > { %2971 = vsyncadd (%p2841_p8), %s2708_s23, 4294966784  ;;  %p14_p10 = scmp.ge.s32.totalorder %s3034_s12, 4   ;;  %s4637_s6 = smov %s2978_s7 }
 0x1a2   : > { %s4638_s7 = smov %s2982_s8  ;;  %s4639_s8 = smov %s3046_s15 }
 0x1a3   : > { %s4640_s9 = smov %s3034_s12  ;;  %16 = sbr.rel (!%p14_p10) target bundleno = 5 (0x5), region = 69 }
 0x1a8   :  { %2714 = vsyncpa [#allocation3], 1 }
 0x1a9   :  { %2716 = vsyncpa [#allocation3 + $0x1], 1 }
 0x1aa   :  { %2717 = vsyncpa [#allocation4], 1 }
 0x1ab   :  { %2719 = vsyncpa [#allocation4 + $0x1], 1 }

</bundles_post_ra>
